<compile_context>
chip_gen: v5e
topology: v5e:2x2
jax: 0.10.0
libtpu: 0.0.40
codegen_flags: <defaults>
</compile_context>

<pallas_src>
import functools

import jax
import jax.numpy as jnp
import numpy as np
from jax import lax
from jax.experimental import pallas as pl
from jax.experimental.pallas import tpu as pltpu

BN_EPS = 1e-5                 # nn.BatchNorm2d default
MXU_DTYPE = jnp.bfloat16      # MXU operand dtype (f32 accumulation)


def _write_taps(s_ref, src, m_left, m_right, W, HW):
    """Write the 9 im2col tap slabs of a 3x3 SAME conv for `src` ((c, H*W)).

    Tap t = (kh*3 + kw) occupies scratch rows [t*c, (t+1)*c).  A tap (dy, dx)
    needs `src` shifted by s = dy*W + dx along the flattened spatial (lane)
    axis.  Out-of-image positions are exactly:
      * the |s| lanes at the shifted-out edge (stored as zeros), and
      * the dx = +-1 column-boundary lanes (zeroed via precomputed masks).
    With c = 2*C (24) every slab store is full-width and sublane-aligned.
    """
    c = src.shape[0]
    t = 0
    for dy in (-1, 0, 1):
        for dx in (-1, 0, 1):
            s = dy * W + dx
            m = m_left if dx == -1 else (m_right if dx == 1 else None)
            r0 = t * c
            if s == 0:
                s_ref[r0:r0 + c, :] = src
            elif s > 0:
                seg = src[:, s:]                       # dst lanes [0, HW-s)
                if m is not None:
                    seg = seg * m[:, :HW - s]
                s_ref[r0:r0 + c, 0:HW - s] = seg
                s_ref[r0:r0 + c, HW - s:HW] = jnp.zeros((c, s), jnp.float32)
            else:
                k = -s
                seg = src[:, :HW - k]                  # dst lanes [k, HW)
                if m is not None:
                    seg = seg * m[:, k:]
                s_ref[r0:r0 + c, k:HW] = seg
                s_ref[r0:r0 + c, 0:k] = jnp.zeros((c, k), jnp.float32)
            t += 1


def ssma_kernel(a_ref, b_ref, cm_ref, wb_ref, wg_ref, wf_ref,
                scale_ref, bias_ref, out_ref, s_ref, *, H, W):
    """One batch element per grid step; fully fused SSMA block.

    a_ref, b_ref : (1, C, H*W) f32   input feature maps (channels x spatial)
    cm_ref       : (2, H*W)    f32   column masks for dx = -1 / +1 taps
    wb_ref       : (Cb, 9*2C)  bf16  bottleneck im2col weights
    wg_ref       : (2C, 9*Cb)  bf16  gate im2col weights
    wf_ref       : (C, 9*2C)   bf16  fuser im2col weights
    scale_ref    : (C, 1)      f32   folded BatchNorm scale
    bias_ref     : (C, 1)      f32   folded BatchNorm bias
    out_ref      : (1, C, H*W) f32
    s_ref        : (9*2C, H*W) f32   reused im2col scratch
    """
    HW = H * W
    Cb = wb_ref.shape[0]
    K2 = 9 * Cb

    m_left = cm_ref[0:1, :]            # valid where x >= 1     (dx = -1)
    m_right = cm_ref[1:2, :]           # valid where x <= W - 2 (dx = +1)

    # Channel-concat once: (2C, HW), matching torch.cat([A, B], dim=1).
    ab = jnp.concatenate([a_ref[0], b_ref[0]], axis=0)

    # ---- bottleneck: 3x3 conv (2C -> Cb) + ReLU, one K = 9*2C matmul -------
    _write_taps(s_ref, ab, m_left, m_right, W, HW)
    g = jnp.dot(wb_ref[...], s_ref[...].astype(MXU_DTYPE),
                preferred_element_type=jnp.float32)            # (Cb, HW)
    g = jnp.maximum(g, 0.0)

    # ---- gate: 3x3 conv (Cb -> 2C) + sigmoid, one K = 9*Cb matmul ----------
    _write_taps(s_ref, g, m_left, m_right, W, HW)              # rows [0, K2)
    gate = jax.nn.sigmoid(jnp.dot(wg_ref[...], s_ref[0:K2, :].astype(MXU_DTYPE),
                                  preferred_element_type=jnp.float32))  # (2C, HW)

    # ---- gating (AB * G) + fuser: 3x3 conv (2C -> C) + folded BatchNorm ----
    _write_taps(s_ref, ab * gate, m_left, m_right, W, HW)
    y = jnp.dot(wf_ref[...], s_ref[...].astype(MXU_DTYPE),
                preferred_element_type=jnp.float32)            # (C, HW)
    y = y * scale_ref[...] + bias_ref[...]                     # inference BN
    out_ref[0] = y.astype(out_ref.dtype)


@jax.jit
def ssma_block(A, B, wb, wg, wf, gamma, beta, mean, var):
    """A, B: NCHW float32; conv weights HWIO.  Returns NCHW float32."""
    N, C, H, W = A.shape
    C2, Cb = 2 * C, wb.shape[3]
    HW = H * W
    K1, K2 = 9 * C2, 9 * Cb

    # (N, C, H, W) -> (N, C, H*W): free reshape; no concat / pad through HBM.
    A2 = A.reshape(N, C, HW)
    B2 = B.reshape(N, C, HW)

    # Column-validity masks for the dx = -1 / +1 taps (row halos are handled
    # by the in-kernel edge zero-stores).
    xcol = jnp.arange(HW, dtype=jnp.int32) % W
    col_masks = jnp.stack([xcol >= 1, xcol <= W - 2], axis=0).astype(jnp.float32)

    # im2col weight matrices, (Cout, 9*Cin), K index = (kh*3 + kw)*Cin + cin.
    wb_m = jnp.transpose(wb, (3, 0, 1, 2)).reshape(Cb, K1).astype(MXU_DTYPE)
    wg_m = jnp.transpose(wg, (3, 0, 1, 2)).reshape(C2, K2).astype(MXU_DTYPE)
    wf_m = jnp.transpose(wf, (3, 0, 1, 2)).reshape(C, K1).astype(MXU_DTYPE)

    # Inference BatchNorm folded to a per-channel affine (kept in f32).
    inv = lax.rsqrt(var + BN_EPS)
    scale = (gamma * inv).reshape(C, 1).astype(jnp.float32)
    bias = (beta - mean * gamma * inv).reshape(C, 1).astype(jnp.float32)

    kernel = functools.partial(ssma_kernel, H=H, W=W)

    # Explicit VMEM budget: double-buffered I/O, reused f32 im2col scratch,
    # bf16 staging for the deep-K matmuls, plus generous headroom.
    step_bytes = (2 * 2 * C * HW * 4          # A, B blocks (double-buffered)
                  + 2 * C * HW * 4            # output block (double-buffered)
                  + K1 * HW * 4               # im2col scratch (f32)
                  + 2 * K1 * HW * 2           # bf16 staging of the stacks
                  + 2 * (Cb + C2 + C) * K1 * 2  # weight matrices
                  + 4 * HW * 4)               # masks / misc
    vmem_limit = int(min(max(4 * step_bytes, 16 * 1024 * 1024),
                         32 * 1024 * 1024))

    out = pl.pallas_call(
        kernel,
        out_shape=jax.ShapeDtypeStruct((N, C, HW), jnp.float32),
        grid_spec=pltpu.PrefetchScalarGridSpec(
            num_scalar_prefetch=0,
            grid=(N,),
            in_specs=[
                pl.BlockSpec((1, C, HW), lambda n: (n, 0, 0)),   # A
                pl.BlockSpec((1, C, HW), lambda n: (n, 0, 0)),   # B
                pl.BlockSpec((2, HW), lambda n: (0, 0)),         # column masks
                pl.BlockSpec((Cb, K1), lambda n: (0, 0)),        # bottleneck W
                pl.BlockSpec((C2, K2), lambda n: (0, 0)),        # gate W
                pl.BlockSpec((C, K1), lambda n: (0, 0)),         # fuser W
                pl.BlockSpec((C, 1), lambda n: (0, 0)),          # BN scale
                pl.BlockSpec((C, 1), lambda n: (0, 0)),          # BN bias
            ],
            out_specs=pl.BlockSpec((1, C, HW), lambda n: (n, 0, 0)),
            scratch_shapes=[pltpu.VMEM((K1, HW), jnp.float32)],
        ),
        compiler_params=pltpu.CompilerParams(
            dimension_semantics=("parallel",),   # batch is independent (v7x megacore)
            vmem_limit_bytes=vmem_limit),
    )(A2, B2, col_masks, wb_m, wg_m, wf_m, scale, bias)

    # TODO(synk): for large H*W, add a row-tiled spatial grid axis (1-row halo)
    # so per-step VMEM stays inside v7x's 64 MiB and DMA/compute overlap.
    return out.reshape(N, C, H, W)


def ssma_reference(A, B, wb, wg, wf, gamma, beta, mean, var):
    """Pure-JAX reference (NCHW in/out, HWIO weights), same bf16-operand /
    f32-accumulate precision as the kernel's MXU path."""
    def conv(x, w):
        return lax.conv_general_dilated(
            x.astype(MXU_DTYPE), w.astype(MXU_DTYPE),
            window_strides=(1, 1), padding="SAME",
            dimension_numbers=("NCHW", "HWIO", "NCHW"),
            preferred_element_type=jnp.float32)

    AB = jnp.concatenate([A, B], axis=1)
    G = jax.nn.relu(conv(AB, wb))
    G = jax.nn.sigmoid(conv(G, wg))
    ABg = AB * G
    F = conv(ABg, wf)
    inv = lax.rsqrt(var + BN_EPS)
    bc = lambda p: p[None, :, None, None]
    return (F - bc(mean)) * bc(inv) * bc(gamma) + bc(beta)


if __name__ == "__main__":
    # Shapes consistent with the module: n_channels=12, compression_rate=6.
    N, C, H, W = 2, 12, 16, 16
    CR = 6
    Cb = C // CR                      # bottleneck channels = 2
    C2 = 2 * C

    key = jax.random.PRNGKey(0)
    kA, kB, kwb, kwg, kwf, kg, kb2, km, kv = jax.random.split(key, 9)

    A = jax.random.normal(kA, (N, C, H, W), jnp.float32)
    B = jax.random.normal(kB, (N, C, H, W), jnp.float32)

    # Deterministic synthetic parameters (HWIO conv weights = PyTorch OIHW
    # transposed (2, 3, 1, 0)); BatchNorm evaluated in inference mode.
    wb = 0.1 * jax.random.normal(kwb, (3, 3, C2, Cb), jnp.float32)   # bottleneck
    wg = 0.1 * jax.random.normal(kwg, (3, 3, Cb, C2), jnp.float32)   # gate
    wf = 0.1 * jax.random.normal(kwf, (3, 3, C2, C), jnp.float32)    # fuser conv
    gamma = 1.0 + 0.1 * jax.random.normal(kg, (C,), jnp.float32)
    beta = 0.1 * jax.random.normal(kb2, (C,), jnp.float32)
    mean = 0.1 * jax.random.normal(km, (C,), jnp.float32)
    var = 0.5 + jnp.abs(jax.random.normal(kv, (C,), jnp.float32))

    out = jax.block_until_ready(
        ssma_block(A, B, wb, wg, wf, gamma, beta, mean, var))
    ref = jax.block_until_ready(
        ssma_reference(A, B, wb, wg, wf, gamma, beta, mean, var))

    assert out.shape == (N, C, H, W), out.shape
    np.testing.assert_allclose(np.asarray(out), np.asarray(ref),
                               rtol=2e-3, atol=2e-3)
    print("KERNEL_OK")
</pallas_src>

<mosaic_0001>
module attributes {stable_mosaic.version = 11 : i64} {
  func.func @ssma_kernel(%arg0: i32, %arg1: memref<1x12x256xf32, #tpu.memory_space<vmem>>, %arg2: memref<1x12x256xf32, #tpu.memory_space<vmem>>, %arg3: memref<2x256xf32, #tpu.memory_space<vmem>>, %arg4: memref<2x216xbf16, #tpu.memory_space<vmem>>, %arg5: memref<24x18xbf16, #tpu.memory_space<vmem>>, %arg6: memref<12x216xbf16, #tpu.memory_space<vmem>>, %arg7: memref<12x1xf32, #tpu.memory_space<vmem>>, %arg8: memref<12x1xf32, #tpu.memory_space<vmem>>, %arg9: memref<1x12x256xf32, #tpu.memory_space<vmem>>, %arg10: memref<216x256xf32, #tpu.memory_space<vmem>>) attributes {dimension_semantics = [#tpu.dimension_semantics<parallel>], iteration_bounds = array<i64: 2>, scalar_prefetch = 0 : i64, scratch_operands = 1 : i64, tpu.core_type = #tpu.core_type<tc>, window_params = [{transform_indices = @transform_0, window_bounds = array<i64: 1, 12, 256>}, {transform_indices = @transform_1, window_bounds = array<i64: 1, 12, 256>}, {pipeline_mode = #tpu.pipeline_mode<synchronous>, transform_indices = @transform_2, window_bounds = array<i64: 2, 256>}, {pipeline_mode = #tpu.pipeline_mode<synchronous>, transform_indices = @transform_3, window_bounds = array<i64: 2, 216>}, {pipeline_mode = #tpu.pipeline_mode<synchronous>, transform_indices = @transform_4, window_bounds = array<i64: 24, 18>}, {pipeline_mode = #tpu.pipeline_mode<synchronous>, transform_indices = @transform_5, window_bounds = array<i64: 12, 216>}, {pipeline_mode = #tpu.pipeline_mode<synchronous>, transform_indices = @transform_6, window_bounds = array<i64: 12, 1>}, {pipeline_mode = #tpu.pipeline_mode<synchronous>, transform_indices = @transform_7, window_bounds = array<i64: 12, 1>}, {transform_indices = @transform_8, window_bounds = array<i64: 1, 12, 256>}]} {
    %c0 = arith.constant 0 : index
    %c0_0 = arith.constant 0 : index
    %0 = vector.load %arg3[%c0, %c0_0] : memref<2x256xf32, #tpu.memory_space<vmem>>, vector<1x256xf32>
    %c1 = arith.constant 1 : index
    %c0_1 = arith.constant 0 : index
    %1 = vector.load %arg3[%c1, %c0_1] : memref<2x256xf32, #tpu.memory_space<vmem>>, vector<1x256xf32>
    %c0_2 = arith.constant 0 : index
    %c0_3 = arith.constant 0 : index
    %c0_4 = arith.constant 0 : index
    %2 = vector.load %arg1[%c0_2, %c0_3, %c0_4] : memref<1x12x256xf32, #tpu.memory_space<vmem>>, vector<1x12x256xf32>
    %3 = vector.shape_cast %2 : vector<1x12x256xf32> to vector<12x256xf32>
    %c0_5 = arith.constant 0 : index
    %c0_6 = arith.constant 0 : index
    %c0_7 = arith.constant 0 : index
    %4 = vector.load %arg2[%c0_5, %c0_6, %c0_7] : memref<1x12x256xf32, #tpu.memory_space<vmem>>, vector<1x12x256xf32>
    %5 = vector.shape_cast %4 : vector<1x12x256xf32> to vector<12x256xf32>
    %6 = tpu.concatenate %3, %5 in 0 : vector<12x256xf32>, vector<12x256xf32> -> vector<24x256xf32>
    %7 = vector.extract_strided_slice %6 {offsets = [0, 0], sizes = [24, 239], strides = [1, 1]} : vector<24x256xf32> to vector<24x239xf32>
    %8 = vector.extract_strided_slice %0 {offsets = [0, 17], sizes = [1, 239], strides = [1, 1]} : vector<1x256xf32> to vector<1x239xf32>
    %9 = vector.broadcast %8 : vector<1x239xf32> to vector<24x239xf32>
    %10 = arith.mulf %7, %9 : vector<24x239xf32>
    %c0_8 = arith.constant 0 : index
    %c17 = arith.constant 17 : index
    %11 = vector.load %arg10[%c0_8, %c17] : memref<216x256xf32, #tpu.memory_space<vmem>>, vector<24x239xf32>
    tpu.vector_store %arg10[%c0_8, %c17], %10 {strides = array<i32>} : memref<216x256xf32, #tpu.memory_space<vmem>>, vector<24x239xf32>,
    %cst = arith.constant 0.000000e+00 : f32
    %12 = vector.broadcast %cst : f32 to vector<24x17xf32>
    %c0_9 = arith.constant 0 : index
    %c0_10 = arith.constant 0 : index
    %13 = vector.load %arg10[%c0_9, %c0_10] : memref<216x256xf32, #tpu.memory_space<vmem>>, vector<24x17xf32>
    tpu.vector_store %arg10[%c0_9, %c0_10], %12 {strides = array<i32>} : memref<216x256xf32, #tpu.memory_space<vmem>>, vector<24x17xf32>,
    %14 = vector.extract_strided_slice %6 {offsets = [0, 0], sizes = [24, 240], strides = [1, 1]} : vector<24x256xf32> to vector<24x240xf32>
    %c24 = arith.constant 24 : index
    %c16 = arith.constant 16 : index
    %15 = vector.load %arg10[%c24, %c16] : memref<216x256xf32, #tpu.memory_space<vmem>>, vector<24x240xf32>
    tpu.vector_store %arg10[%c24, %c16], %14 {strides = array<i32>} : memref<216x256xf32, #tpu.memory_space<vmem>>, vector<24x240xf32>,
    %cst_11 = arith.constant 0.000000e+00 : f32
    %16 = vector.broadcast %cst_11 : f32 to vector<24x16xf32>
    %c24_12 = arith.constant 24 : index
    %c0_13 = arith.constant 0 : index
    %17 = vector.load %arg10[%c24_12, %c0_13] : memref<216x256xf32, #tpu.memory_space<vmem>>, vector<24x16xf32>
    tpu.vector_store %arg10[%c24_12, %c0_13], %16 {strides = array<i32>} : memref<216x256xf32, #tpu.memory_space<vmem>>, vector<24x16xf32>,
    %18 = vector.extract_strided_slice %6 {offsets = [0, 0], sizes = [24, 241], strides = [1, 1]} : vector<24x256xf32> to vector<24x241xf32>
    %19 = vector.extract_strided_slice %1 {offsets = [0, 15], sizes = [1, 241], strides = [1, 1]} : vector<1x256xf32> to vector<1x241xf32>
    %20 = vector.broadcast %19 : vector<1x241xf32> to vector<24x241xf32>
    %21 = arith.mulf %18, %20 : vector<24x241xf32>
    %c48 = arith.constant 48 : index
    %c15 = arith.constant 15 : index
    %22 = vector.load %arg10[%c48, %c15] : memref<216x256xf32, #tpu.memory_space<vmem>>, vector<24x241xf32>
    tpu.vector_store %arg10[%c48, %c15], %21 {strides = array<i32>} : memref<216x256xf32, #tpu.memory_space<vmem>>, vector<24x241xf32>,
    %cst_14 = arith.constant 0.000000e+00 : f32
    %23 = vector.broadcast %cst_14 : f32 to vector<24x15xf32>
    %c48_15 = arith.constant 48 : index
    %c0_16 = arith.constant 0 : index
    %24 = vector.load %arg10[%c48_15, %c0_16] : memref<216x256xf32, #tpu.memory_space<vmem>>, vector<24x15xf32>
    tpu.vector_store %arg10[%c48_15, %c0_16], %23 {strides = array<i32>} : memref<216x256xf32, #tpu.memory_space<vmem>>, vector<24x15xf32>,
    %25 = vector.extract_strided_slice %6 {offsets = [0, 0], sizes = [24, 255], strides = [1, 1]} : vector<24x256xf32> to vector<24x255xf32>
    %26 = vector.extract_strided_slice %0 {offsets = [0, 1], sizes = [1, 255], strides = [1, 1]} : vector<1x256xf32> to vector<1x255xf32>
    %27 = vector.broadcast %26 : vector<1x255xf32> to vector<24x255xf32>
    %28 = arith.mulf %25, %27 : vector<24x255xf32>
    %c72 = arith.constant 72 : index
    %c1_17 = arith.constant 1 : index
    %29 = vector.load %arg10[%c72, %c1_17] : memref<216x256xf32, #tpu.memory_space<vmem>>, vector<24x255xf32>
    tpu.vector_store %arg10[%c72, %c1_17], %28 {strides = array<i32>} : memref<216x256xf32, #tpu.memory_space<vmem>>, vector<24x255xf32>,
    %cst_18 = arith.constant 0.000000e+00 : f32
    %30 = vector.broadcast %cst_18 : f32 to vector<24x1xf32>
    %c72_19 = arith.constant 72 : index
    %c0_20 = arith.constant 0 : index
    %31 = vector.load %arg10[%c72_19, %c0_20] : memref<216x256xf32, #tpu.memory_space<vmem>>, vector<24x1xf32>
    tpu.vector_store %arg10[%c72_19, %c0_20], %30 {strides = array<i32>} : memref<216x256xf32, #tpu.memory_space<vmem>>, vector<24x1xf32>,
    %c96 = arith.constant 96 : index
    %c0_21 = arith.constant 0 : index
    %32 = vector.load %arg10[%c96, %c0_21] : memref<216x256xf32, #tpu.memory_space<vmem>>, vector<24x256xf32>
    tpu.vector_store %arg10[%c96, %c0_21], %6 {strides = array<i32>} : memref<216x256xf32, #tpu.memory_space<vmem>>, vector<24x256xf32>,
    %33 = vector.extract_strided_slice %6 {offsets = [0, 1], sizes = [24, 255], strides = [1, 1]} : vector<24x256xf32> to vector<24x255xf32>
    %34 = vector.extract_strided_slice %1 {offsets = [0, 0], sizes = [1, 255], strides = [1, 1]} : vector<1x256xf32> to vector<1x255xf32>
    %35 = vector.broadcast %34 : vector<1x255xf32> to vector<24x255xf32>
    %36 = arith.mulf %33, %35 : vector<24x255xf32>
    %c120 = arith.constant 120 : index
    %c0_22 = arith.constant 0 : index
    %37 = vector.load %arg10[%c120, %c0_22] : memref<216x256xf32, #tpu.memory_space<vmem>>, vector<24x255xf32>
    tpu.vector_store %arg10[%c120, %c0_22], %36 {strides = array<i32>} : memref<216x256xf32, #tpu.memory_space<vmem>>, vector<24x255xf32>,
    %cst_23 = arith.constant 0.000000e+00 : f32
    %38 = vector.broadcast %cst_23 : f32 to vector<24x1xf32>
    %c120_24 = arith.constant 120 : index
    %c255 = arith.constant 255 : index
    %39 = vector.load %arg10[%c120_24, %c255] : memref<216x256xf32, #tpu.memory_space<vmem>>, vector<24x1xf32>
    tpu.vector_store %arg10[%c120_24, %c255], %38 {strides = array<i32>} : memref<216x256xf32, #tpu.memory_space<vmem>>, vector<24x1xf32>,
    %40 = vector.extract_strided_slice %6 {offsets = [0, 15], sizes = [24, 241], strides = [1, 1]} : vector<24x256xf32> to vector<24x241xf32>
    %41 = vector.extract_strided_slice %0 {offsets = [0, 0], sizes = [1, 241], strides = [1, 1]} : vector<1x256xf32> to vector<1x241xf32>
    %42 = vector.broadcast %41 : vector<1x241xf32> to vector<24x241xf32>
    %43 = arith.mulf %40, %42 : vector<24x241xf32>
    %c144 = arith.constant 144 : index
    %c0_25 = arith.constant 0 : index
    %44 = vector.load %arg10[%c144, %c0_25] : memref<216x256xf32, #tpu.memory_space<vmem>>, vector<24x241xf32>
    tpu.vector_store %arg10[%c144, %c0_25], %43 {strides = array<i32>} : memref<216x256xf32, #tpu.memory_space<vmem>>, vector<24x241xf32>,
    %cst_26 = arith.constant 0.000000e+00 : f32
    %45 = vector.broadcast %cst_26 : f32 to vector<24x15xf32>
    %c144_27 = arith.constant 144 : index
    %c241 = arith.constant 241 : index
    %46 = vector.load %arg10[%c144_27, %c241] : memref<216x256xf32, #tpu.memory_space<vmem>>, vector<24x15xf32>
    tpu.vector_store %arg10[%c144_27, %c241], %45 {strides = array<i32>} : memref<216x256xf32, #tpu.memory_space<vmem>>, vector<24x15xf32>,
    %47 = vector.extract_strided_slice %6 {offsets = [0, 16], sizes = [24, 240], strides = [1, 1]} : vector<24x256xf32> to vector<24x240xf32>
    %c168 = arith.constant 168 : index
    %c0_28 = arith.constant 0 : index
    %48 = vector.load %arg10[%c168, %c0_28] : memref<216x256xf32, #tpu.memory_space<vmem>>, vector<24x240xf32>
    tpu.vector_store %arg10[%c168, %c0_28], %47 {strides = array<i32>} : memref<216x256xf32, #tpu.memory_space<vmem>>, vector<24x240xf32>,
    %cst_29 = arith.constant 0.000000e+00 : f32
    %49 = vector.broadcast %cst_29 : f32 to vector<24x16xf32>
    %c168_30 = arith.constant 168 : index
    %c240 = arith.constant 240 : index
    %50 = vector.load %arg10[%c168_30, %c240] : memref<216x256xf32, #tpu.memory_space<vmem>>, vector<24x16xf32>
    tpu.vector_store %arg10[%c168_30, %c240], %49 {strides = array<i32>} : memref<216x256xf32, #tpu.memory_space<vmem>>, vector<24x16xf32>,
    %51 = vector.extract_strided_slice %6 {offsets = [0, 17], sizes = [24, 239], strides = [1, 1]} : vector<24x256xf32> to vector<24x239xf32>
    %52 = vector.extract_strided_slice %1 {offsets = [0, 0], sizes = [1, 239], strides = [1, 1]} : vector<1x256xf32> to vector<1x239xf32>
    %53 = vector.broadcast %52 : vector<1x239xf32> to vector<24x239xf32>
    %54 = arith.mulf %51, %53 : vector<24x239xf32>
    %c192 = arith.constant 192 : index
    %c0_31 = arith.constant 0 : index
    %55 = vector.load %arg10[%c192, %c0_31] : memref<216x256xf32, #tpu.memory_space<vmem>>, vector<24x239xf32>
    tpu.vector_store %arg10[%c192, %c0_31], %54 {strides = array<i32>} : memref<216x256xf32, #tpu.memory_space<vmem>>, vector<24x239xf32>,
    %cst_32 = arith.constant 0.000000e+00 : f32
    %56 = vector.broadcast %cst_32 : f32 to vector<24x17xf32>
    %c192_33 = arith.constant 192 : index
    %c239 = arith.constant 239 : index
    %57 = vector.load %arg10[%c192_33, %c239] : memref<216x256xf32, #tpu.memory_space<vmem>>, vector<24x17xf32>
    tpu.vector_store %arg10[%c192_33, %c239], %56 {strides = array<i32>} : memref<216x256xf32, #tpu.memory_space<vmem>>, vector<24x17xf32>,
    %c0_34 = arith.constant 0 : index
    %c0_35 = arith.constant 0 : index
    %58 = vector.load %arg4[%c0_34, %c0_35] : memref<2x216xbf16, #tpu.memory_space<vmem>>, vector<2x216xbf16>
    %c0_36 = arith.constant 0 : index
    %c0_37 = arith.constant 0 : index
    %59 = vector.load %arg10[%c0_36, %c0_37] : memref<216x256xf32, #tpu.memory_space<vmem>>, vector<216x256xf32>
    %60 = arith.truncf %59 : vector<216x256xf32> to vector<216x256xbf16>
    %cst_38 = arith.constant dense<0.000000e+00> : vector<2x256xf32>
    %61 = tpu.matmul %58, %60, %cst_38 {dimension_numbers = #tpu.dot_dimension_numbers<[1], [0], [0], [1], [0, 0, 1, 1], [], []>} : vector<2x216xbf16>, vector<216x256xbf16>, vector<2x256xf32> -> vector<2x256xf32>
    %cst_39 = arith.constant 0.000000e+00 : f32
    %62 = vector.broadcast %cst_39 : f32 to vector<2x256xf32>
    %63 = arith.maximumf %61, %62 : vector<2x256xf32>
    %64 = vector.extract_strided_slice %63 {offsets = [0, 0], sizes = [2, 239], strides = [1, 1]} : vector<2x256xf32> to vector<2x239xf32>
    %65 = vector.extract_strided_slice %0 {offsets = [0, 17], sizes = [1, 239], strides = [1, 1]} : vector<1x256xf32> to vector<1x239xf32>
    %66 = vector.broadcast %65 : vector<1x239xf32> to vector<2x239xf32>
    %67 = arith.mulf %64, %66 : vector<2x239xf32>
    %c0_40 = arith.constant 0 : index
    %c17_41 = arith.constant 17 : index
    %68 = vector.load %arg10[%c0_40, %c17_41] : memref<216x256xf32, #tpu.memory_space<vmem>>, vector<2x239xf32>
    tpu.vector_store %arg10[%c0_40, %c17_41], %67 {strides = array<i32>} : memref<216x256xf32, #tpu.memory_space<vmem>>, vector<2x239xf32>,
    %cst_42 = arith.constant 0.000000e+00 : f32
    %69 = vector.broadcast %cst_42 : f32 to vector<2x17xf32>
    %c0_43 = arith.constant 0 : index
    %c0_44 = arith.constant 0 : index
    %70 = vector.load %arg10[%c0_43, %c0_44] : memref<216x256xf32, #tpu.memory_space<vmem>>, vector<2x17xf32>
    tpu.vector_store %arg10[%c0_43, %c0_44], %69 {strides = array<i32>} : memref<216x256xf32, #tpu.memory_space<vmem>>, vector<2x17xf32>,
    %71 = vector.extract_strided_slice %63 {offsets = [0, 0], sizes = [2, 240], strides = [1, 1]} : vector<2x256xf32> to vector<2x240xf32>
    %c2 = arith.constant 2 : index
    %c16_45 = arith.constant 16 : index
    %72 = vector.load %arg10[%c2, %c16_45] : memref<216x256xf32, #tpu.memory_space<vmem>>, vector<2x240xf32>
    tpu.vector_store %arg10[%c2, %c16_45], %71 {strides = array<i32>} : memref<216x256xf32, #tpu.memory_space<vmem>>, vector<2x240xf32>,
    %cst_46 = arith.constant 0.000000e+00 : f32
    %73 = vector.broadcast %cst_46 : f32 to vector<2x16xf32>
    %c2_47 = arith.constant 2 : index
    %c0_48 = arith.constant 0 : index
    %74 = vector.load %arg10[%c2_47, %c0_48] : memref<216x256xf32, #tpu.memory_space<vmem>>, vector<2x16xf32>
    tpu.vector_store %arg10[%c2_47, %c0_48], %73 {strides = array<i32>} : memref<216x256xf32, #tpu.memory_space<vmem>>, vector<2x16xf32>,
    %75 = vector.extract_strided_slice %63 {offsets = [0, 0], sizes = [2, 241], strides = [1, 1]} : vector<2x256xf32> to vector<2x241xf32>
    %76 = vector.extract_strided_slice %1 {offsets = [0, 15], sizes = [1, 241], strides = [1, 1]} : vector<1x256xf32> to vector<1x241xf32>
    %77 = vector.broadcast %76 : vector<1x241xf32> to vector<2x241xf32>
    %78 = arith.mulf %75, %77 : vector<2x241xf32>
    %c4 = arith.constant 4 : index
    %c15_49 = arith.constant 15 : index
    %79 = vector.load %arg10[%c4, %c15_49] : memref<216x256xf32, #tpu.memory_space<vmem>>, vector<2x241xf32>
    tpu.vector_store %arg10[%c4, %c15_49], %78 {strides = array<i32>} : memref<216x256xf32, #tpu.memory_space<vmem>>, vector<2x241xf32>,
    %cst_50 = arith.constant 0.000000e+00 : f32
    %80 = vector.broadcast %cst_50 : f32 to vector<2x15xf32>
    %c4_51 = arith.constant 4 : index
    %c0_52 = arith.constant 0 : index
    %81 = vector.load %arg10[%c4_51, %c0_52] : memref<216x256xf32, #tpu.memory_space<vmem>>, vector<2x15xf32>
    tpu.vector_store %arg10[%c4_51, %c0_52], %80 {strides = array<i32>} : memref<216x256xf32, #tpu.memory_space<vmem>>, vector<2x15xf32>,
    %82 = vector.extract_strided_slice %63 {offsets = [0, 0], sizes = [2, 255], strides = [1, 1]} : vector<2x256xf32> to vector<2x255xf32>
    %83 = vector.extract_strided_slice %0 {offsets = [0, 1], sizes = [1, 255], strides = [1, 1]} : vector<1x256xf32> to vector<1x255xf32>
    %84 = vector.broadcast %83 : vector<1x255xf32> to vector<2x255xf32>
    %85 = arith.mulf %82, %84 : vector<2x255xf32>
    %c6 = arith.constant 6 : index
    %c1_53 = arith.constant 1 : index
    %86 = vector.load %arg10[%c6, %c1_53] : memref<216x256xf32, #tpu.memory_space<vmem>>, vector<2x255xf32>
    tpu.vector_store %arg10[%c6, %c1_53], %85 {strides = array<i32>} : memref<216x256xf32, #tpu.memory_space<vmem>>, vector<2x255xf32>,
    %cst_54 = arith.constant 0.000000e+00 : f32
    %87 = vector.broadcast %cst_54 : f32 to vector<2x1xf32>
    %c6_55 = arith.constant 6 : index
    %c0_56 = arith.constant 0 : index
    %88 = vector.load %arg10[%c6_55, %c0_56] : memref<216x256xf32, #tpu.memory_space<vmem>>, vector<2x1xf32>
    tpu.vector_store %arg10[%c6_55, %c0_56], %87 {strides = array<i32>} : memref<216x256xf32, #tpu.memory_space<vmem>>, vector<2x1xf32>,
    %c8 = arith.constant 8 : index
    %c0_57 = arith.constant 0 : index
    %89 = vector.load %arg10[%c8, %c0_57] : memref<216x256xf32, #tpu.memory_space<vmem>>, vector<2x256xf32>
    tpu.vector_store %arg10[%c8, %c0_57], %63 {strides = array<i32>} : memref<216x256xf32, #tpu.memory_space<vmem>>, vector<2x256xf32>,
    %90 = vector.extract_strided_slice %63 {offsets = [0, 1], sizes = [2, 255], strides = [1, 1]} : vector<2x256xf32> to vector<2x255xf32>
    %91 = vector.extract_strided_slice %1 {offsets = [0, 0], sizes = [1, 255], strides = [1, 1]} : vector<1x256xf32> to vector<1x255xf32>
    %92 = vector.broadcast %91 : vector<1x255xf32> to vector<2x255xf32>
    %93 = arith.mulf %90, %92 : vector<2x255xf32>
    %c10 = arith.constant 10 : index
    %c0_58 = arith.constant 0 : index
    %94 = vector.load %arg10[%c10, %c0_58] : memref<216x256xf32, #tpu.memory_space<vmem>>, vector<2x255xf32>
    tpu.vector_store %arg10[%c10, %c0_58], %93 {strides = array<i32>} : memref<216x256xf32, #tpu.memory_space<vmem>>, vector<2x255xf32>,
    %cst_59 = arith.constant 0.000000e+00 : f32
    %95 = vector.broadcast %cst_59 : f32 to vector<2x1xf32>
    %c10_60 = arith.constant 10 : index
    %c255_61 = arith.constant 255 : index
    %96 = vector.load %arg10[%c10_60, %c255_61] : memref<216x256xf32, #tpu.memory_space<vmem>>, vector<2x1xf32>
    tpu.vector_store %arg10[%c10_60, %c255_61], %95 {strides = array<i32>} : memref<216x256xf32, #tpu.memory_space<vmem>>, vector<2x1xf32>,
    %97 = vector.extract_strided_slice %63 {offsets = [0, 15], sizes = [2, 241], strides = [1, 1]} : vector<2x256xf32> to vector<2x241xf32>
    %98 = vector.extract_strided_slice %0 {offsets = [0, 0], sizes = [1, 241], strides = [1, 1]} : vector<1x256xf32> to vector<1x241xf32>
    %99 = vector.broadcast %98 : vector<1x241xf32> to vector<2x241xf32>
    %100 = arith.mulf %97, %99 : vector<2x241xf32>
    %c12 = arith.constant 12 : index
    %c0_62 = arith.constant 0 : index
    %101 = vector.load %arg10[%c12, %c0_62] : memref<216x256xf32, #tpu.memory_space<vmem>>, vector<2x241xf32>
    tpu.vector_store %arg10[%c12, %c0_62], %100 {strides = array<i32>} : memref<216x256xf32, #tpu.memory_space<vmem>>, vector<2x241xf32>,
    %cst_63 = arith.constant 0.000000e+00 : f32
    %102 = vector.broadcast %cst_63 : f32 to vector<2x15xf32>
    %c12_64 = arith.constant 12 : index
    %c241_65 = arith.constant 241 : index
    %103 = vector.load %arg10[%c12_64, %c241_65] : memref<216x256xf32, #tpu.memory_space<vmem>>, vector<2x15xf32>
    tpu.vector_store %arg10[%c12_64, %c241_65], %102 {strides = array<i32>} : memref<216x256xf32, #tpu.memory_space<vmem>>, vector<2x15xf32>,
    %104 = vector.extract_strided_slice %63 {offsets = [0, 16], sizes = [2, 240], strides = [1, 1]} : vector<2x256xf32> to vector<2x240xf32>
    %c14 = arith.constant 14 : index
    %c0_66 = arith.constant 0 : index
    %105 = vector.load %arg10[%c14, %c0_66] : memref<216x256xf32, #tpu.memory_space<vmem>>, vector<2x240xf32>
    tpu.vector_store %arg10[%c14, %c0_66], %104 {strides = array<i32>} : memref<216x256xf32, #tpu.memory_space<vmem>>, vector<2x240xf32>,
    %cst_67 = arith.constant 0.000000e+00 : f32
    %106 = vector.broadcast %cst_67 : f32 to vector<2x16xf32>
    %c14_68 = arith.constant 14 : index
    %c240_69 = arith.constant 240 : index
    %107 = vector.load %arg10[%c14_68, %c240_69] : memref<216x256xf32, #tpu.memory_space<vmem>>, vector<2x16xf32>
    tpu.vector_store %arg10[%c14_68, %c240_69], %106 {strides = array<i32>} : memref<216x256xf32, #tpu.memory_space<vmem>>, vector<2x16xf32>,
    %108 = vector.extract_strided_slice %63 {offsets = [0, 17], sizes = [2, 239], strides = [1, 1]} : vector<2x256xf32> to vector<2x239xf32>
    %109 = vector.extract_strided_slice %1 {offsets = [0, 0], sizes = [1, 239], strides = [1, 1]} : vector<1x256xf32> to vector<1x239xf32>
    %110 = vector.broadcast %109 : vector<1x239xf32> to vector<2x239xf32>
    %111 = arith.mulf %108, %110 : vector<2x239xf32>
    %c16_70 = arith.constant 16 : index
    %c0_71 = arith.constant 0 : index
    %112 = vector.load %arg10[%c16_70, %c0_71] : memref<216x256xf32, #tpu.memory_space<vmem>>, vector<2x239xf32>
    tpu.vector_store %arg10[%c16_70, %c0_71], %111 {strides = array<i32>} : memref<216x256xf32, #tpu.memory_space<vmem>>, vector<2x239xf32>,
    %cst_72 = arith.constant 0.000000e+00 : f32
    %113 = vector.broadcast %cst_72 : f32 to vector<2x17xf32>
    %c16_73 = arith.constant 16 : index
    %c239_74 = arith.constant 239 : index
    %114 = vector.load %arg10[%c16_73, %c239_74] : memref<216x256xf32, #tpu.memory_space<vmem>>, vector<2x17xf32>
    tpu.vector_store %arg10[%c16_73, %c239_74], %113 {strides = array<i32>} : memref<216x256xf32, #tpu.memory_space<vmem>>, vector<2x17xf32>,
    %c0_75 = arith.constant 0 : index
    %c0_76 = arith.constant 0 : index
    %115 = vector.load %arg5[%c0_75, %c0_76] : memref<24x18xbf16, #tpu.memory_space<vmem>>, vector<24x18xbf16>
    %c0_77 = arith.constant 0 : index
    %c0_78 = arith.constant 0 : index
    %116 = vector.load %arg10[%c0_77, %c0_78] : memref<216x256xf32, #tpu.memory_space<vmem>>, vector<18x256xf32>
    %117 = arith.truncf %116 : vector<18x256xf32> to vector<18x256xbf16>
    %cst_79 = arith.constant dense<0.000000e+00> : vector<24x256xf32>
    %118 = tpu.matmul %115, %117, %cst_79 {dimension_numbers = #tpu.dot_dimension_numbers<[1], [0], [0], [1], [0, 0, 1, 1], [], []>} : vector<24x18xbf16>, vector<18x256xbf16>, vector<24x256xf32> -> vector<24x256xf32>
    %119 = arith.negf %118 : vector<24x256xf32>
    %120 = math.exp %119 : vector<24x256xf32>
    %cst_80 = arith.constant 1.000000e+00 : f32
    %121 = vector.broadcast %cst_80 : f32 to vector<24x256xf32>
    %122 = arith.addf %121, %120 : vector<24x256xf32>
    %123 = arith.divf %121, %122 : vector<24x256xf32>
    %124 = arith.mulf %6, %123 : vector<24x256xf32>
    %125 = vector.extract_strided_slice %124 {offsets = [0, 0], sizes = [24, 239], strides = [1, 1]} : vector<24x256xf32> to vector<24x239xf32>
    %126 = vector.extract_strided_slice %0 {offsets = [0, 17], sizes = [1, 239], strides = [1, 1]} : vector<1x256xf32> to vector<1x239xf32>
    %127 = vector.broadcast %126 : vector<1x239xf32> to vector<24x239xf32>
    %128 = arith.mulf %125, %127 : vector<24x239xf32>
    %c0_81 = arith.constant 0 : index
    %c17_82 = arith.constant 17 : index
    %129 = vector.load %arg10[%c0_81, %c17_82] : memref<216x256xf32, #tpu.memory_space<vmem>>, vector<24x239xf32>
    tpu.vector_store %arg10[%c0_81, %c17_82], %128 {strides = array<i32>} : memref<216x256xf32, #tpu.memory_space<vmem>>, vector<24x239xf32>,
    %cst_83 = arith.constant 0.000000e+00 : f32
    %130 = vector.broadcast %cst_83 : f32 to vector<24x17xf32>
    %c0_84 = arith.constant 0 : index
    %c0_85 = arith.constant 0 : index
    %131 = vector.load %arg10[%c0_84, %c0_85] : memref<216x256xf32, #tpu.memory_space<vmem>>, vector<24x17xf32>
    tpu.vector_store %arg10[%c0_84, %c0_85], %130 {strides = array<i32>} : memref<216x256xf32, #tpu.memory_space<vmem>>, vector<24x17xf32>,
    %132 = vector.extract_strided_slice %124 {offsets = [0, 0], sizes = [24, 240], strides = [1, 1]} : vector<24x256xf32> to vector<24x240xf32>
    %c24_86 = arith.constant 24 : index
    %c16_87 = arith.constant 16 : index
    %133 = vector.load %arg10[%c24_86, %c16_87] : memref<216x256xf32, #tpu.memory_space<vmem>>, vector<24x240xf32>
    tpu.vector_store %arg10[%c24_86, %c16_87], %132 {strides = array<i32>} : memref<216x256xf32, #tpu.memory_space<vmem>>, vector<24x240xf32>,
    %cst_88 = arith.constant 0.000000e+00 : f32
    %134 = vector.broadcast %cst_88 : f32 to vector<24x16xf32>
    %c24_89 = arith.constant 24 : index
    %c0_90 = arith.constant 0 : index
    %135 = vector.load %arg10[%c24_89, %c0_90] : memref<216x256xf32, #tpu.memory_space<vmem>>, vector<24x16xf32>
    tpu.vector_store %arg10[%c24_89, %c0_90], %134 {strides = array<i32>} : memref<216x256xf32, #tpu.memory_space<vmem>>, vector<24x16xf32>,
    %136 = vector.extract_strided_slice %124 {offsets = [0, 0], sizes = [24, 241], strides = [1, 1]} : vector<24x256xf32> to vector<24x241xf32>
    %137 = vector.extract_strided_slice %1 {offsets = [0, 15], sizes = [1, 241], strides = [1, 1]} : vector<1x256xf32> to vector<1x241xf32>
    %138 = vector.broadcast %137 : vector<1x241xf32> to vector<24x241xf32>
    %139 = arith.mulf %136, %138 : vector<24x241xf32>
    %c48_91 = arith.constant 48 : index
    %c15_92 = arith.constant 15 : index
    %140 = vector.load %arg10[%c48_91, %c15_92] : memref<216x256xf32, #tpu.memory_space<vmem>>, vector<24x241xf32>
    tpu.vector_store %arg10[%c48_91, %c15_92], %139 {strides = array<i32>} : memref<216x256xf32, #tpu.memory_space<vmem>>, vector<24x241xf32>,
    %cst_93 = arith.constant 0.000000e+00 : f32
    %141 = vector.broadcast %cst_93 : f32 to vector<24x15xf32>
    %c48_94 = arith.constant 48 : index
    %c0_95 = arith.constant 0 : index
    %142 = vector.load %arg10[%c48_94, %c0_95] : memref<216x256xf32, #tpu.memory_space<vmem>>, vector<24x15xf32>
    tpu.vector_store %arg10[%c48_94, %c0_95], %141 {strides = array<i32>} : memref<216x256xf32, #tpu.memory_space<vmem>>, vector<24x15xf32>,
    %143 = vector.extract_strided_slice %124 {offsets = [0, 0], sizes = [24, 255], strides = [1, 1]} : vector<24x256xf32> to vector<24x255xf32>
    %144 = vector.extract_strided_slice %0 {offsets = [0, 1], sizes = [1, 255], strides = [1, 1]} : vector<1x256xf32> to vector<1x255xf32>
    %145 = vector.broadcast %144 : vector<1x255xf32> to vector<24x255xf32>
    %146 = arith.mulf %143, %145 : vector<24x255xf32>
    %c72_96 = arith.constant 72 : index
    %c1_97 = arith.constant 1 : index
    %147 = vector.load %arg10[%c72_96, %c1_97] : memref<216x256xf32, #tpu.memory_space<vmem>>, vector<24x255xf32>
    tpu.vector_store %arg10[%c72_96, %c1_97], %146 {strides = array<i32>} : memref<216x256xf32, #tpu.memory_space<vmem>>, vector<24x255xf32>,
    %cst_98 = arith.constant 0.000000e+00 : f32
    %148 = vector.broadcast %cst_98 : f32 to vector<24x1xf32>
    %c72_99 = arith.constant 72 : index
    %c0_100 = arith.constant 0 : index
    %149 = vector.load %arg10[%c72_99, %c0_100] : memref<216x256xf32, #tpu.memory_space<vmem>>, vector<24x1xf32>
    tpu.vector_store %arg10[%c72_99, %c0_100], %148 {strides = array<i32>} : memref<216x256xf32, #tpu.memory_space<vmem>>, vector<24x1xf32>,
    %c96_101 = arith.constant 96 : index
    %c0_102 = arith.constant 0 : index
    %150 = vector.load %arg10[%c96_101, %c0_102] : memref<216x256xf32, #tpu.memory_space<vmem>>, vector<24x256xf32>
    tpu.vector_store %arg10[%c96_101, %c0_102], %124 {strides = array<i32>} : memref<216x256xf32, #tpu.memory_space<vmem>>, vector<24x256xf32>,
    %151 = vector.extract_strided_slice %124 {offsets = [0, 1], sizes = [24, 255], strides = [1, 1]} : vector<24x256xf32> to vector<24x255xf32>
    %152 = vector.extract_strided_slice %1 {offsets = [0, 0], sizes = [1, 255], strides = [1, 1]} : vector<1x256xf32> to vector<1x255xf32>
    %153 = vector.broadcast %152 : vector<1x255xf32> to vector<24x255xf32>
    %154 = arith.mulf %151, %153 : vector<24x255xf32>
    %c120_103 = arith.constant 120 : index
    %c0_104 = arith.constant 0 : index
    %155 = vector.load %arg10[%c120_103, %c0_104] : memref<216x256xf32, #tpu.memory_space<vmem>>, vector<24x255xf32>
    tpu.vector_store %arg10[%c120_103, %c0_104], %154 {strides = array<i32>} : memref<216x256xf32, #tpu.memory_space<vmem>>, vector<24x255xf32>,
    %cst_105 = arith.constant 0.000000e+00 : f32
    %156 = vector.broadcast %cst_105 : f32 to vector<24x1xf32>
    %c120_106 = arith.constant 120 : index
    %c255_107 = arith.constant 255 : index
    %157 = vector.load %arg10[%c120_106, %c255_107] : memref<216x256xf32, #tpu.memory_space<vmem>>, vector<24x1xf32>
    tpu.vector_store %arg10[%c120_106, %c255_107], %156 {strides = array<i32>} : memref<216x256xf32, #tpu.memory_space<vmem>>, vector<24x1xf32>,
    %158 = vector.extract_strided_slice %124 {offsets = [0, 15], sizes = [24, 241], strides = [1, 1]} : vector<24x256xf32> to vector<24x241xf32>
    %159 = vector.extract_strided_slice %0 {offsets = [0, 0], sizes = [1, 241], strides = [1, 1]} : vector<1x256xf32> to vector<1x241xf32>
    %160 = vector.broadcast %159 : vector<1x241xf32> to vector<24x241xf32>
    %161 = arith.mulf %158, %160 : vector<24x241xf32>
    %c144_108 = arith.constant 144 : index
    %c0_109 = arith.constant 0 : index
    %162 = vector.load %arg10[%c144_108, %c0_109] : memref<216x256xf32, #tpu.memory_space<vmem>>, vector<24x241xf32>
    tpu.vector_store %arg10[%c144_108, %c0_109], %161 {strides = array<i32>} : memref<216x256xf32, #tpu.memory_space<vmem>>, vector<24x241xf32>,
    %cst_110 = arith.constant 0.000000e+00 : f32
    %163 = vector.broadcast %cst_110 : f32 to vector<24x15xf32>
    %c144_111 = arith.constant 144 : index
    %c241_112 = arith.constant 241 : index
    %164 = vector.load %arg10[%c144_111, %c241_112] : memref<216x256xf32, #tpu.memory_space<vmem>>, vector<24x15xf32>
    tpu.vector_store %arg10[%c144_111, %c241_112], %163 {strides = array<i32>} : memref<216x256xf32, #tpu.memory_space<vmem>>, vector<24x15xf32>,
    %165 = vector.extract_strided_slice %124 {offsets = [0, 16], sizes = [24, 240], strides = [1, 1]} : vector<24x256xf32> to vector<24x240xf32>
    %c168_113 = arith.constant 168 : index
    %c0_114 = arith.constant 0 : index
    %166 = vector.load %arg10[%c168_113, %c0_114] : memref<216x256xf32, #tpu.memory_space<vmem>>, vector<24x240xf32>
    tpu.vector_store %arg10[%c168_113, %c0_114], %165 {strides = array<i32>} : memref<216x256xf32, #tpu.memory_space<vmem>>, vector<24x240xf32>,
    %cst_115 = arith.constant 0.000000e+00 : f32
    %167 = vector.broadcast %cst_115 : f32 to vector<24x16xf32>
    %c168_116 = arith.constant 168 : index
    %c240_117 = arith.constant 240 : index
    %168 = vector.load %arg10[%c168_116, %c240_117] : memref<216x256xf32, #tpu.memory_space<vmem>>, vector<24x16xf32>
    tpu.vector_store %arg10[%c168_116, %c240_117], %167 {strides = array<i32>} : memref<216x256xf32, #tpu.memory_space<vmem>>, vector<24x16xf32>,
    %169 = vector.extract_strided_slice %124 {offsets = [0, 17], sizes = [24, 239], strides = [1, 1]} : vector<24x256xf32> to vector<24x239xf32>
    %170 = vector.extract_strided_slice %1 {offsets = [0, 0], sizes = [1, 239], strides = [1, 1]} : vector<1x256xf32> to vector<1x239xf32>
    %171 = vector.broadcast %170 : vector<1x239xf32> to vector<24x239xf32>
    %172 = arith.mulf %169, %171 : vector<24x239xf32>
    %c192_118 = arith.constant 192 : index
    %c0_119 = arith.constant 0 : index
    %173 = vector.load %arg10[%c192_118, %c0_119] : memref<216x256xf32, #tpu.memory_space<vmem>>, vector<24x239xf32>
    tpu.vector_store %arg10[%c192_118, %c0_119], %172 {strides = array<i32>} : memref<216x256xf32, #tpu.memory_space<vmem>>, vector<24x239xf32>,
    %cst_120 = arith.constant 0.000000e+00 : f32
    %174 = vector.broadcast %cst_120 : f32 to vector<24x17xf32>
    %c192_121 = arith.constant 192 : index
    %c239_122 = arith.constant 239 : index
    %175 = vector.load %arg10[%c192_121, %c239_122] : memref<216x256xf32, #tpu.memory_space<vmem>>, vector<24x17xf32>
    tpu.vector_store %arg10[%c192_121, %c239_122], %174 {strides = array<i32>} : memref<216x256xf32, #tpu.memory_space<vmem>>, vector<24x17xf32>,
    %c0_123 = arith.constant 0 : index
    %c0_124 = arith.constant 0 : index
    %176 = vector.load %arg6[%c0_123, %c0_124] : memref<12x216xbf16, #tpu.memory_space<vmem>>, vector<12x216xbf16>
    %c0_125 = arith.constant 0 : index
    %c0_126 = arith.constant 0 : index
    %177 = vector.load %arg10[%c0_125, %c0_126] : memref<216x256xf32, #tpu.memory_space<vmem>>, vector<216x256xf32>
    %178 = arith.truncf %177 : vector<216x256xf32> to vector<216x256xbf16>
    %cst_127 = arith.constant dense<0.000000e+00> : vector<12x256xf32>
    %179 = tpu.matmul %176, %178, %cst_127 {dimension_numbers = #tpu.dot_dimension_numbers<[1], [0], [0], [1], [0, 0, 1, 1], [], []>} : vector<12x216xbf16>, vector<216x256xbf16>, vector<12x256xf32> -> vector<12x256xf32>
    %c0_128 = arith.constant 0 : index
    %c0_129 = arith.constant 0 : index
    %180 = vector.load %arg7[%c0_128, %c0_129] : memref<12x1xf32, #tpu.memory_space<vmem>>, vector<12x1xf32>
    %181 = vector.broadcast %180 : vector<12x1xf32> to vector<12x256xf32>
    %182 = arith.mulf %179, %181 : vector<12x256xf32>
    %c0_130 = arith.constant 0 : index
    %c0_131 = arith.constant 0 : index
    %183 = vector.load %arg8[%c0_130, %c0_131] : memref<12x1xf32, #tpu.memory_space<vmem>>, vector<12x1xf32>
    %184 = vector.broadcast %183 : vector<12x1xf32> to vector<12x256xf32>
    %185 = arith.addf %182, %184 : vector<12x256xf32>
    %c0_132 = arith.constant 0 : index
    %c0_133 = arith.constant 0 : index
    %c0_134 = arith.constant 0 : index
    %186 = vector.load %arg9[%c0_132, %c0_133, %c0_134] : memref<1x12x256xf32, #tpu.memory_space<vmem>>, vector<1x12x256xf32>
    %187 = vector.shape_cast %186 : vector<1x12x256xf32> to vector<12x256xf32>
    %188 = vector.shape_cast %185 : vector<12x256xf32> to vector<1x12x256xf32>
    tpu.vector_store %arg9[%c0_132, %c0_133, %c0_134], %188 {strides = array<i32>} : memref<1x12x256xf32, #tpu.memory_space<vmem>>, vector<1x12x256xf32>,
    return
  }
  func.func @transform_0(%arg0: i32) -> (i32, i32, i32) {
    %c0_i32 = arith.constant 0 : i32
    %c0_i32_0 = arith.constant 0 : i32
    %c0_i32_1 = arith.constant 0 : i32
    return %arg0, %c0_i32, %c0_i32_0 : i32, i32, i32
  }
  func.func @transform_1(%arg0: i32) -> (i32, i32, i32) {
    %c0_i32 = arith.constant 0 : i32
    %c0_i32_0 = arith.constant 0 : i32
    %c0_i32_1 = arith.constant 0 : i32
    return %arg0, %c0_i32, %c0_i32_0 : i32, i32, i32
  }
  func.func @transform_2(%arg0: i32) -> (i32, i32) {
    %c0_i32 = arith.constant 0 : i32
    %c0_i32_0 = arith.constant 0 : i32
    %c0_i32_1 = arith.constant 0 : i32
    return %c0_i32, %c0_i32_0 : i32, i32
  }
  func.func @transform_3(%arg0: i32) -> (i32, i32) {
    %c0_i32 = arith.constant 0 : i32
    %c0_i32_0 = arith.constant 0 : i32
    %c0_i32_1 = arith.constant 0 : i32
    return %c0_i32, %c0_i32_0 : i32, i32
  }
  func.func @transform_4(%arg0: i32) -> (i32, i32) {
    %c0_i32 = arith.constant 0 : i32
    %c0_i32_0 = arith.constant 0 : i32
    %c0_i32_1 = arith.constant 0 : i32
    return %c0_i32, %c0_i32_0 : i32, i32
  }
  func.func @transform_5(%arg0: i32) -> (i32, i32) {
    %c0_i32 = arith.constant 0 : i32
    %c0_i32_0 = arith.constant 0 : i32
    %c0_i32_1 = arith.constant 0 : i32
    return %c0_i32, %c0_i32_0 : i32, i32
  }
  func.func @transform_6(%arg0: i32) -> (i32, i32) {
    %c0_i32 = arith.constant 0 : i32
    %c0_i32_0 = arith.constant 0 : i32
    %c0_i32_1 = arith.constant 0 : i32
    return %c0_i32, %c0_i32_0 : i32, i32
  }
  func.func @transform_7(%arg0: i32) -> (i32, i32) {
    %c0_i32 = arith.constant 0 : i32
    %c0_i32_0 = arith.constant 0 : i32
    %c0_i32_1 = arith.constant 0 : i32
    return %c0_i32, %c0_i32_0 : i32, i32
  }
  func.func @transform_8(%arg0: i32) -> (i32, i32, i32) {
    %c0_i32 = arith.constant 0 : i32
    %c0_i32_0 = arith.constant 0 : i32
    %c0_i32_1 = arith.constant 0 : i32
    return %arg0, %c0_i32, %c0_i32_0 : i32, i32, i32
  }
}

</mosaic_0001>

<bundles_post_ra>
// kernel: ssma_block.1
= control target key start
LH: loop header
LB: loop body
LE: loop exit
PB: predicated region body
PF: predicated region fallthrough
CT: control target
= control target key end

     0   :  { %s1960_s27 = smov 0   ;;  %s2801_s0 = inlined_call_operand.vmem [shape: f32[2,12,256], index: 0, kind: input, shape index: {}]   ;;  %s2802_s1 = inlined_call_operand.vmem [shape: f32[2,12,256], index: 1, kind: input, shape index: {}]   ;;  %s2803_s2 = inlined_call_operand.vmem [shape: f32[2,256], index: 2, kind: input, shape index: {}]   ;;  %s2804_s3 = inlined_call_operand.vmem [shape: bf16[2,216], index: 3, kind: input, shape index: {}]   ;;  %s2805_s4 = inlined_call_operand.vmem [shape: bf16[24,18], index: 4, kind: input, shape index: {}]   ;;  %s2806_s5 = inlined_call_operand.vmem [shape: bf16[12,216], index: 5, kind: input, shape index: {}]   ;;  %s2807_s6 = inlined_call_operand.vmem [shape: f32[12,1], index: 6, kind: input, shape index: {}]   ;;  %s2808_s7 = inlined_call_operand.vmem [shape: f32[12,1], index: 7, kind: input, shape index: {}]   ;;  %s2809_s8 = inlined_call_operand.vmem [shape: f32[2,12,256], index: 8, kind: output, shape index: {}]  }
   0x1 LB: > { %s1804_s28 = sadd.s32 4294967295, %s1903_s27   ;;  %p1808_p0 = scmp.ge.s32.totalorder %s1903_s27, 1  ;;  %s1903_s27 = sphi %s1960_s27, %s18_s27  }
   0x2   : > { %p272_p1 = scmp.lt.s32.totalorder %s1903_s27, 3 }
   0x4   : > { %p273_p2 = pnand %p1808_p0, %p272_p1 }
   0x5   : > { %s1905_s11 = smov (!%p273_p2), 17   ;;  %s1906_s12 = smov (!%p273_p2), 1  }
   0x6   : > { %276 = sbr.rel (%p273_p2) target bundleno = 1196 (0x4ac), region = 52  ;;  %s1907_s13 = smov (!%p273_p2), 127  }
   0x7   : > { %p311_p3 = scmp.lt.s32.totalorder (!%p273_p2), %s1804_s28, 1  ;;  %s1908_s14 = smov (!%p273_p2), 113  }
   0x8   : > { %s1909_s16 = smov (!%p273_p2), 15   ;;  %s1910_s20 = smov (!%p273_p2), 111  }
   0x9   : > { %s1911_s24 = smov (!%p273_p2), 16   ;;  %s1912_s25 = smov (!%p273_p2), 112  }
   0xb   : > { %v1815_v0 = vld [vmem:[%s2803_s2 + $0x1] ss:$2 sm:$0x3]  ;;  %v327_v2 = vld [vmem:[%s2803_s2] ss:$2 sm:$0x3] }
   0xc   : > { %v447_v1 = vperm.slane %v1815_v0, 0  ;;  %v356_v3 = vperm.slane %v327_v2, 0  ;;  %v448_v4 = vperm.slane %v1815_v0, 1  ;;  %v357_v5 = vperm.slane %v327_v2, 1  ;;  %s2854_s28 = smov (!%p311_p3, %s1804_s28), 1 }
   0xd   : > { %s1982_s15 = sshll.u32 %s2854_s28, 5  ;;  %vm2811_vm0 = vcmask 1043456   ;;  %vm533_vm1 = vcmask 7168   ;;  %vm505_vm2 = vcmask 1039360   ;;  %vm671_vm3 = vcmask 916480  }
   0xe   : > { %691 = vrot.lane.b32.xlu1 %v447_v1, %s1905_s11  ;;  %559 = vrot.lane.b32.xlu0 %v447_v1, %s1906_s12  ;;  %s320_s19 = scalar_lea.vmem %s2802_s1, %s1982_s15  ;;  %s1996_s23 = scalar_lea.vmem %s2801_s0, %s1982_s15  ;;  %vm687_vm4 = vcmask 1048448   ;;  %v1913_v41 = vmov 0.0   ;;  %vm2819_vm5 = vcmask 138240   ;;  %vm2810_vm6 = vcmask 1047680  }
   0xf   : > { %501 = vrot.lane.b32.xlu2 %v356_v3, %s1907_s13  ;;  %v334_v6 = vld [vmem:[%s320_s19] sm:$0xff]  ;;  %v336_v7 = vld [vmem:[%s320_s19 + $0x10] sm:$0xf]  ;;  %v337_v8 = vld [vmem:[%s320_s19 + $0x18] sm:$0xf]  ;;  %vm426_vm7 = vcmask 130048   ;;  %s325_s9 = scalar_lea.vmem %s2809_s8, %s1982_s15 }
  0x10   : > { %v335_v9 = vld [vmem:[%s320_s19 + $0x8] sm:$0xff]  ;;  %v343_v10 = vrot.slane %v334_v6, 4  ;;  %v345_v11 = vrot.slane %v336_v7, 4  ;;  %v347_v12 = vrot.slane %v337_v8, 4  ;;  %v333_v14 = vld [vmem:[%s1996_s23 + $0x18] sm:$0xf] }
  0x11   : > { %v344_v13 = vrot.slane %v335_v9, 4  ;;  %v332_v18 = vld [vmem:[%s1996_s23 + $0x10] sm:$0xf]  ;;  %v2016_v19 = vld [vmem:[%s1996_s23 + $0x8] sm:$0xff]  ;;  %v2036_v21 = vld [vmem:[%s1996_s23] sm:$0xff]  ;;  %vm453_vm8 = vcmask 924672  }
  0x12   : > { %v2000_v15 = vsel %vm2811_vm0, %v343_v10, %v345_v11  ;;  %v2019_v20 = vsel %vm2811_vm0, %v332_v18, %v343_v10  ;;  %vm481_vm9 = vcmask 121856   ;;  %vm362_vm10 = vcmask 908288  }
  0x13   : > { %v2003_v16 = vsel %vm2811_vm0, %v344_v13, %v347_v12  ;;  %v2006_v17 = vsel %vm2811_vm0, %v333_v14, %v344_v13  ;;  %vm2818_vm11 = vcmask 1048568   ;;  %vm2816_vm12 = vcmask 1047560  }
  0x14   : > { %vm2817_vm13 = vcmask 1048440   ;;  %vm2814_vm14 = vcmask 1047672   ;;  %vm2815_vm15 = vcmask 1048456  }
  0x16   : > { %693 = vrot.lane.b32.xlu1 %v448_v4, %s1905_s11  ;;  %561 = vrot.lane.b32.xlu0 %v448_v4, %s1906_s12 }
  0x17   : > { %503 = vrot.lane.b32.xlu2 %v357_v5, %s1907_s13 }
  0x1e   : > { %451 = vrot.lane.b32.xlu1 %v448_v4, %s1908_s14  ;;  %449 = vrot.lane.b32.xlu0 %v447_v1, %s1908_s14 }
  0x1f   : > { %609 = vrot.lane.b32.xlu2 %v356_v3, %s1909_s16 }
  0x26   : > { %611 = vrot.lane.b32.xlu0 %v357_v5, %s1909_s16  ;;  %358 = vrot.lane.b32.xlu1 %v356_v3, %s1910_s20 }
  0x27   : > { %360 = vrot.lane.b32.xlu2 %v357_v5, %s1910_s20 }
  0x2e   : > { %422 = vrot.lane.b32.xlu1 %v2000_v15, %s1911_s24  ;;  %669 = vrot.lane.b32.xlu0 %v2003_v16, %s1912_s25 }
  0x2f   : > { %665 = vrot.lane.b32.xlu2 %v2006_v17, %s1912_s25 }
  0x36   : > { %661 = vrot.lane.b32.xlu1 %v2016_v19, %s1912_s25  ;;  %420 = vrot.lane.b32.xlu0 %v2006_v17, %s1911_s24 }
  0x37   : > { %418 = vrot.lane.b32.xlu2 %v2019_v20, %s1911_s24 }
  0x3e   : > { %416 = vrot.lane.b32.xlu1 %v2016_v19, %s1911_s24  ;;  %414 = vrot.lane.b32.xlu0 %v2036_v21, %s1911_s24 }
  0x3f   : > { %424 = vrot.lane.b32.xlu2 %v2003_v16, %s1911_s24 }
  0x46   : > { %663 = vrot.lane.b32.xlu1 %v2019_v20, %s1912_s25 }
  0x47   : > { %667 = vrot.lane.b32.xlu2 %v2000_v15, %s1912_s25 }
  0x69   : > { %v502_v22 = vpop.permute.xlu2 %501 }
  0x71   : > { %v2040_v23 = vpop.permute.xlu2 %503 }
  0x72   : > { %v512_v24 = vmul.f32 %v2040_v23, %v2006_v17  ;;  %v514_v25 = vmul.f32 %v2040_v23, %v2003_v16  ;;  %v510_v26 = vmul.f32 %v2040_v23, %v2016_v19  ;;  %v2088_v42 = vsel %vm505_vm2, %v502_v22, %v2040_v23 }
  0x73   : > { %v509_v46 = vmul.f32 %v2088_v42, %v2036_v21  ;;  %v513_v59 = vmul.f32 %v2088_v42, %v2000_v15  ;;  %v511_v2 = vmul.f32 %v2088_v42, %v2019_v20 }
  0x74   : > { %527 = vrot.lane.b32.xlu0 %v512_v24, %s1906_s12  ;;  %531 = vrot.lane.b32.xlu2 %v514_v25, %s1906_s12 }
  0x75   : > { %523 = vrot.lane.b32.xlu1 %v510_v26, %s1906_s12 }
  0x79   : > { %v2057_v30 = vpop.permute.xlu2 %609 }
  0x80   : > { %v2051_v27 = vpop.permute.xlu1 %691  ;;  %v2053_v28 = vpop.permute.xlu0 %559 }
  0x81   : > { %v566_v29 = vmul.f32 %v2053_v28, %v2036_v21  ;;  %v700_v32 = vmul.f32 %v2051_v27, %v2019_v20  ;;  %v2063_v34 = vpop.permute.xlu2 %360  ;;  %v702_v44 = vmul.f32 %v2051_v27, %v2000_v15  ;;  %v698_v51 = vmul.f32 %v2051_v27, %v2036_v21 }
  0x82   : > { %v371_v57 = vmul.f32 %v2063_v34, %v2003_v16 }
  0x83   : > { %578 = vrot.lane.b32.xlu0 %v566_v29, %s1907_s13 }
  0x88   : > { %v694_v31 = vpop.permute.xlu1 %693  ;;  %v562_v33 = vpop.permute.xlu0 %561 }
  0x89   : > { %v2067_v35 = vsel %vm533_vm1, %v2053_v28, %v562_v33  ;;  %v2080_v40 = vpop.permute.xlu2 %665  ;;  %v2102_v48 = vsel %vm2819_vm5, %v2051_v27, %v694_v31  ;;  %v369_v33 = vmul.f32 %v2063_v34, %v2006_v17 }
  0x8a   : > { %v567_v39 = vmul.f32 %v2067_v35, %v2016_v19  ;;  %684 = vst.msk [vmem:[#allocation2 + $0x168] sm:$0xff] %vm671_vm3, %v2080_v40  ;;  %v703_v50 = vmul.f32 %v2102_v48, %v2003_v16  ;;  %v701_v53 = vmul.f32 %v2102_v48, %v2006_v17  ;;  %v699_v6 = vmul.f32 %v2102_v48, %v2016_v19 }
  0x8b   : > { %714 = vrot.lane.b32.xlu0 %v700_v32, %s1910_s20  ;;  %689 = vst.msk [vmem:[#allocation2 + $0x168] sm:$0xff] %vm687_vm4, %v1913_v41  ;;  %v367_v32 = vmul.f32 %v2063_v34, %v2016_v19 }
  0x90   : > { %v2069_v36 = vpop.permute.xlu1 %451  ;;  %v450_v52 = vpop.permute.xlu0 %449 }
  0x91   : > { %v462_v37 = vmul.f32 %v2069_v36, %v2003_v16  ;;  %v460_v38 = vmul.f32 %v2069_v36, %v2006_v17  ;;  %v458_v45 = vmul.f32 %v2069_v36, %v2016_v19  ;;  %v419_v47 = vpop.permute.xlu2 %418  ;;  %v2123_v56 = vsel %vm453_vm8, %v450_v52, %v2069_v36 }
  0x92   : > { %439 = vst.msk [vmem:[#allocation2 + $0x40] sm:$0xff] %vm2810_vm6, %v419_v47  ;;  %v459_v60 = vmul.f32 %v2123_v56, %v2019_v20  ;;  %v461_v1 = vmul.f32 %v2123_v56, %v2000_v15  ;;  %v457_v7 = vmul.f32 %v2123_v56, %v2036_v21 }
  0x93   : > { %479 = vrot.lane.b32.xlu2 %v462_v37, %s1909_s16  ;;  %475 = vrot.lane.b32.xlu1 %v460_v38, %s1909_s16  ;;  %444 = vst.msk [vmem:[#allocation2 + $0x40] sm:$0xff] %vm426_vm7, %v1913_v41  ;;  %v571_v37 = vmul.f32 %v2067_v35, %v2003_v16  ;;  %v569_v38 = vmul.f32 %v2067_v35, %v2006_v17 }
  0x94   : > { %580 = vrot.lane.b32.xlu0 %v567_v39, %s1907_s13  ;;  %v620_v39 = vmul.f32 %v2057_v30, %v2000_v15 }
  0x98   : > { %v359_v43 = vpop.permute.xlu1 %358  ;;  %v612_v61 = vpop.permute.xlu0 %611 }
  0x99   : > { %v425_v54 = vpop.permute.xlu2 %424  ;;  %v2142_v62 = vsel %vm481_vm9, %v2057_v30, %v612_v61  ;;  %v2169_v10 = vsel %vm362_vm10, %v359_v43, %v2063_v34  ;;  %v618_v43 = vmul.f32 %v2057_v30, %v2019_v20 }
  0x9a   : > { %v621_v63 = vmul.f32 %v2142_v62, %v2003_v16  ;;  %v619_v9 = vmul.f32 %v2142_v62, %v2006_v17  ;;  %v370_v14 = vmul.f32 %v2169_v10, %v2000_v15  ;;  %v366_v22 = vmul.f32 %v2169_v10, %v2036_v21 }
  0x9b   : > { %718 = vrot.lane.b32.xlu1 %v702_v44, %s1910_s20  ;;  %471 = vrot.lane.b32.xlu2 %v458_v45, %s1909_s16  ;;  %v617_v24 = vmul.f32 %v2142_v62, %v2016_v19  ;;  %v368_v31 = vmul.f32 %v2169_v10, %v2019_v20  ;;  %v570_v44 = vmul.f32 %v2053_v28, %v2000_v15 }
  0x9c   : > { %521 = vrot.lane.b32.xlu0 %v509_v46, %s1906_s12  ;;  %v568_v45 = vmul.f32 %v2053_v28, %v2019_v20 }
  0xa0   : > { %v423_v49 = vpop.permute.xlu1 %422  ;;  %v670_v4 = vpop.permute.xlu0 %669 }
  0xa1   : > { %441 = vst.msk [vmem:[#allocation2 + $0x50] sm:$0xff] %vm2810_vm6, %v423_v49  ;;  %v2119_v55 = vsel %vm426_vm7, %v423_v49, %v425_v54  ;;  %v668_v3 = vpop.permute.xlu2 %667 }
  0xa2   : > { %445 = vst.msk [vmem:[#allocation2 + $0x50] sm:$0xff] %vm426_vm7, %v1913_v41  ;;  %v2154_v5 = vsel %vm671_vm3, %v668_v3, %v670_v4 }
  0xa3   : > { %720 = vrot.lane.b32.xlu1 %v703_v50, %s1910_s20  ;;  %710 = vrot.lane.b32.xlu2 %v698_v51, %s1910_s20  ;;  %686 = vst.msk [vmem:[#allocation2 + $0x178] sm:$0xff] %vm671_vm3, %v670_v4 }
  0xa4   : > { %716 = vrot.lane.b32.xlu0 %v701_v53, %s1910_s20  ;;  %690 = vst.msk [vmem:[#allocation2 + $0x178] sm:$0xff] %vm687_vm4, %v1913_v41 }
  0xa8   : > { %v2127_v58 = vpop.permute.xlu1 %661  ;;  %v421_v12 = vpop.permute.xlu0 %420 }
  0xa9   : > { %682 = vst.msk [vmem:[#allocation2 + $0x158] sm:$0xff] %vm671_vm3, %v2127_v58  ;;  %v2177_v13 = vsel %vm426_vm7, %v419_v47, %v421_v12 }
  0xaa   : > { %688 = vst.msk [vmem:[#allocation2 + $0x158] sm:$0xff] %vm687_vm4, %v1913_v41  ;;  %v801_v25 = vpack.c.bf16 %v2119_v55, %v2177_v13 }
  0xab   : > { %529 = vrot.lane.b32.xlu1 %v513_v59, %s1906_s12  ;;  %388 = vrot.lane.b32.xlu2 %v371_v57, %s1905_s11 }
  0xac   : > { %473 = vrot.lane.b32.xlu0 %v459_v60, %s1909_s16 }
  0xb0   : > { %v417_v0 = vpop.permute.xlu1 %416  ;;  %v415_v26 = vpop.permute.xlu0 %414 }
  0xb1   : > { %v2193_v29 = vsel %vm426_vm7, %v415_v26, %v417_v0  ;;  %437 = vst.msk [vmem:[#allocation2 + $0x30] sm:$0xff] %vm2810_vm6, %v415_v26  ;;  %v808_v26 = vpack.c.bf16 %v2019_v20, %v2036_v21  ;;  %vm2813_vm6 = vcmask 1047688  }
  0xb2   : > { %443 = vst.msk [vmem:[#allocation2 + $0x30] sm:$0xff] %vm426_vm7, %v1913_v41 }
  0xb3   : > { %477 = vrot.lane.b32.xlu1 %v461_v1, %s1909_s16  ;;  %525 = vrot.lane.b32.xlu2 %v511_v2, %s1906_s12 }
  0xb4   : > { %638 = vrot.lane.b32.xlu0 %v621_v63, %s1908_s14 }
  0xb8   : > { %v664_v8 = vpop.permute.xlu1 %663 }
  0xb9   : > { %v2174_v11 = vsel %vm671_vm3, %v664_v8, %v2080_v40  ;;  %v616_v40 = vmul.f32 %v2057_v30, %v2036_v21 }
  0xba   : > { %v818_v18 = vpack.c.bf16 %v2154_v5, %v2174_v11 }
  0xbb   : > { %712 = vrot.lane.b32.xlu2 %v699_v6, %s1910_s20  ;;  %469 = vrot.lane.b32.xlu1 %v457_v7, %s1909_s16  ;;  %v809_v6 = vpack.c.bf16 %v2006_v17, %v2016_v19 }
  0xbc   : > { %634 = vrot.lane.b32.xlu0 %v619_v9, %s1908_s14 }
  0xc3   : > { %630 = vrot.lane.b32.xlu2 %v617_v24, %s1908_s14  ;;  %386 = vrot.lane.b32.xlu1 %v370_v14, %s1905_s11 }
  0xc4   : > { %378 = vrot.lane.b32.xlu0 %v366_v22, %s1905_s11 }
  0xcb   : > { %382 = vrot.lane.b32.xlu2 %v368_v31, %s1905_s11  ;;  %380 = vrot.lane.b32.xlu1 %v367_v32, %s1905_s11 }
  0xcc   : > { %384 = vrot.lane.b32.xlu0 %v369_v33, %s1905_s11 }
  0xce   : > { %v532_v46 = vpop.permute.xlu2 %531 }
  0xd3   : > { %588 = vrot.lane.b32.xlu2 %v571_v37, %s1907_s13  ;;  %584 = vrot.lane.b32.xlu1 %v569_v38, %s1907_s13 }
  0xd4   : > { %636 = vrot.lane.b32.xlu0 %v620_v39, %s1908_s14 }
  0xdb   : > { %628 = vrot.lane.b32.xlu2 %v616_v40, %s1908_s14  ;;  %659 = vrot.lane.b32.xlu1 %v2036_v21, %s1912_s25 }
  0xdc   : > { %632 = vrot.lane.b32.xlu0 %v618_v43, %s1908_s14 }
  0xe3   : > { %586 = vrot.lane.b32.xlu2 %v570_v44, %s1907_s13  ;;  %582 = vrot.lane.b32.xlu1 %v568_v45, %s1907_s13 }
  0xe6   : > { %v528_v47 = vpop.permute.xlu0 %527 }
  0xe7   : > { %v2234_v52 = vpop.permute.xlu1 %523 }
  0xed   : > { %v2230_v49 = vpop.permute.xlu2 %479 }
  0xf5   : > { %v2232_v50 = vpop.permute.xlu2 %471  ;;  %v579_v51 = vpop.permute.xlu0 %578 }
  0xfd   : > { %v711_v53 = vpop.permute.xlu2 %710  ;;  %v715_v54 = vpop.permute.xlu0 %714 }
 0x105   : > { %v2236_v57 = vpop.permute.xlu1 %475  ;;  %v2238_v59 = vpop.permute.xlu2 %388 }
 0x106   : > { %v581_v60 = vpop.permute.xlu0 %580 }
 0x107   : > { %v590_v61 = vsel %vm505_vm2, %v579_v51, %v581_v60  ;;  %600 = vst.msk [vmem:[#allocation2 + $0xf8] sm:$0xff] %vm505_vm2, %v581_v60  ;;  %v787_v51 = vld [vmem:[#allocation2 + $0x168] sm:$0xff] }
 0x108   : > { %606 = vst.msk [vmem:[#allocation2 + $0xf8] sm:$0xff] %vm2818_vm11, %v1913_v41  ;;  %v810_v63 = vpack.c.bf16 %v590_v61, %v2000_v15 }
 0x10a   : > { %838 = vmatpush.bf16.msra.mxu0 %v810_v63 }
 0x10d   : > { %v719_v0 = vpop.permute.xlu1 %718  ;;  %v526_v1 = vpop.permute.xlu2 %525 }
 0x10e   : > { %546 = vst.msk [vmem:[#allocation2 + $0xa0] sm:$0xff] %vm2816_vm12, %v526_v1  ;;  %v522_v2 = vpop.permute.xlu0 %521  ;;  %839 = vmatpush.bf16.msra.mxu0 %v808_v26  ;;  %v535_v37 = vsel %vm533_vm1, %v526_v1, %v528_v47 }
 0x10f   : > { %551 = vst.msk [vmem:[#allocation2 + $0xa0] sm:$0xff] %vm533_vm1, %v1913_v41  ;;  %v773_v3 = vld [vmem:[#allocation2 + $0xf8] sm:$0xff]  ;;  %v534_v63 = vsel %vm533_vm1, %v522_v2, %v2234_v52 }
 0x110   : > { %544 = vst.msk [vmem:[#allocation2 + $0x90] sm:$0xff] %vm2816_vm12, %v522_v2  ;;  %v811_v4 = vpack.c.bf16 %v773_v3, %v2003_v16 }
 0x111   : > { %550 = vst.msk [vmem:[#allocation2 + $0x90] sm:$0xff] %vm533_vm1, %v1913_v41 }
 0x112   : > { %864 = vmatpush.bf16.msra.mxu2 %v811_v4 }
 0x115   : > { %v721_v7 = vpop.permute.xlu1 %720  ;;  %v713_v8 = vpop.permute.xlu2 %712 }
 0x116   : > { %v724_v9 = vsel %vm362_vm10, %v719_v0, %v721_v7  ;;  %736 = vst.msk [vmem:[#allocation2 + $0x1a8] sm:$0xff] %vm362_vm10, %v721_v7  ;;  %v717_v12 = vpop.permute.xlu0 %716  ;;  %865 = vmatpush.bf16.msra.mxu2 %v809_v6  ;;  %v722_v22 = vsel %vm362_vm10, %v711_v53, %v713_v8  ;;  %v789_v53 = vld [vmem:[#allocation2 + $0x178] sm:$0xff] }
 0x117   : > { %740 = vst.msk [vmem:[#allocation2 + $0x1a8] sm:$0xff] %vm2817_vm13, %v1913_v41  ;;  %v822_v14 = vpack.c.bf16 %v724_v9, %v724_v9  ;;  %v723_v19 = vsel %vm362_vm10, %v715_v54, %v717_v12  ;;  %v762_v54 = vld [vmem:[#allocation2 + $0xa0] sm:$0xff]  ;;  %v819_v0 = vpack.c.bf16 %v789_v53, %v787_v51 }
 0x118   : > { %732 = vst.msk [vmem:[#allocation2 + $0x188] sm:$0xff] %vm362_vm10, %v713_v8  ;;  %v820_v31 = vpack.c.bf16 %v723_v19, %v722_v22 }
 0x119   : > { %738 = vst.msk [vmem:[#allocation2 + $0x188] sm:$0xff] %vm2817_vm13, %v1913_v41  ;;  %v833_v24 = vsel %vm2811_vm0, %v822_v14, 0  ;;  %v785_v14 = vld [vmem:[#allocation2 + $0x158] sm:$0xff] }
 0x11a   : > { %734 = vst.msk [vmem:[#allocation2 + $0x198] sm:$0xff] %vm362_vm10, %v717_v12  ;;  %853 = vmatpush.bf16.msra.mxu1 %v833_v24 }
 0x11b   : > { %739 = vst.msk [vmem:[#allocation2 + $0x198] sm:$0xff] %vm2817_vm13, %v1913_v41  ;;  %vm922_vm13 = vcmask 125954  }
 0x11d   : > { %v530_v32 = vpop.permute.xlu1 %529  ;;  %v2269_v33 = vpop.permute.xlu2 %630 }
 0x11e   : > { %v536_v38 = vsel %vm533_vm1, %v530_v32, %v532_v46  ;;  %548 = vst.msk [vmem:[#allocation2 + $0xb0] sm:$0xff] %vm2816_vm12, %v530_v32  ;;  %v474_v39 = vpop.permute.xlu0 %473  ;;  %854 = vmatpush.bf16.msra.mxu1 %v820_v31  ;;  %v795_v40 = vld [vmem:[#allocation2 + $0x1a8] sm:$0xff]  ;;  %vm919_vm12 = vcmask 1043586  }
 0x11f   : > { %552 = vst.msk [vmem:[#allocation2 + $0xb0] sm:$0xff] %vm533_vm1, %v1913_v41  ;;  %v807_v43 = vpack.c.bf16 %v536_v38, %v535_v37  ;;  %v823_v21 = vpack.c.bf16 %v795_v40, %v795_v40  ;;  %v483_v4 = vsel %vm481_vm9, %v474_v39, %v2236_v57  ;;  %v741_v57 = vld [vmem:[%s2804_s3] sm:$0x3] }
 0x120   : > { %650 = vst.msk [vmem:[#allocation2 + $0x128] sm:$0xff] %vm453_vm8, %v2269_v33  ;;  %v791_v44 = vld [vmem:[#allocation2 + $0x188] sm:$0xff] }
 0x121   : > { %656 = vst.msk [vmem:[#allocation2 + $0x128] sm:$0xff] %vm2815_vm15, %v1913_v41  ;;  %866 = vmatpush.bf16.msra.mxu2 %v807_v43  ;;  %v836_v45 = vsel %vm2811_vm0, %v823_v21, 0  ;;  %vm2812_vm0 = vcmask 719872  }
 0x122   : > { %494 = vst.msk [vmem:[#allocation2 + $0x70] sm:$0xff] %vm2814_vm14, %v474_v39  ;;  %855 = vmatpush.bf16.msra.mxu1 %v818_v18  ;;  %879 = vmatpush.bf16.msra.mxu3 %v836_v45  ;;  %v793_v46 = vld [vmem:[#allocation2 + $0x198] sm:$0xff] }
 0x123   : > { %499 = vst.msk [vmem:[#allocation2 + $0x70] sm:$0xff] %vm481_vm9, %v1913_v41  ;;  %v821_v47 = vpack.c.bf16 %v793_v46, %v791_v44  ;;  %v748_v44 = vld [vmem:[#allocation2 + $0x30] sm:$0xff] }
 0x124   : > { %825 = vst [vmem:[#allocation1] ss:$9 sm:$0xff] %v741_v57 }
 0x125   : > { %v478_v60 = vpop.permute.xlu1 %477  ;;  %v2287_v61 = vpop.permute.xlu2 %382 }
 0x126   : > { %v484_v5 = vsel %vm481_vm9, %v478_v60, %v2230_v49  ;;  %496 = vst.msk [vmem:[#allocation2 + $0x80] sm:$0xff] %vm2814_vm14, %v478_v60  ;;  %v2294_v11 = vpop.permute.xlu0 %638  ;;  %880 = vmatpush.bf16.msra.mxu3 %v821_v47  ;;  %v764_v18 = vld [vmem:[#allocation2 + $0xb0] sm:$0xff] }
 0x127   : > { %500 = vst.msk [vmem:[#allocation2 + $0x80] sm:$0xff] %vm481_vm9, %v1913_v41  ;;  %v805_v1 = vpack.c.bf16 %v534_v63, %v484_v5  ;;  %v806_v3 = vpack.c.bf16 %v764_v18, %v762_v54  ;;  %v760_v49 = vld [vmem:[#allocation2 + $0x90] sm:$0xff] }
 0x128   : > { %403 = vst.msk [vmem:[#allocation2 + $0x10] sm:$0xff] %vm2813_vm6, %v2287_v61  ;;  %v779_v31 = vld [vmem:[#allocation2 + $0x128] sm:$0xff] }
 0x129   : > { %408 = vst.msk [vmem:[#allocation2 + $0x10] sm:$0xff] %vm2819_vm5, %v1913_v41  ;;  %867 = vmatpush.bf16.msra.mxu2 %v805_v1  ;;  %840 = vmatpush.bf16.msra.mxu0 %v806_v3 }
 0x12a   : > { %654 = vst.msk [vmem:[#allocation2 + $0x148] sm:$0xff] %vm453_vm8, %v2294_v11  ;;  %881 = vmatpush.bf16.msra.mxu3 %v819_v0  ;;  %v756_v37 = vld [vmem:[#allocation2 + $0x70] sm:$0xff] }
 0x12b   : > { %658 = vst.msk [vmem:[#allocation2 + $0x148] sm:$0xff] %vm2815_vm15, %v1913_v41  ;;  %v826_v53 = vld [vmem:[#allocation1] sm:$0xff] }
 0x12d   : > { %v2306_v52 = vpop.permute.xlu2 %588  ;;  %v470_v2 = vpop.permute.xlu1 %469 }
 0x12e   : > { %604 = vst.msk [vmem:[#allocation2 + $0x118] sm:$0xff] %vm505_vm2, %v2306_v52  ;;  %v2312_v6 = vpop.permute.xlu0 %634  ;;  %v482_v7 = vsel %vm481_vm9, %v470_v2, %v2232_v50  ;;  %v758_v8 = vld [vmem:[#allocation2 + $0x80] sm:$0xff] }
 0x12f   : > { %608 = vst.msk [vmem:[#allocation2 + $0x118] sm:$0xff] %vm2818_vm11, %v1913_v41  ;;  %v803_v9 = vpack.c.bf16 %v483_v4, %v482_v7  ;;  %v804_v12 = vpack.c.bf16 %v760_v49, %v758_v8 }
 0x130   : > { %652 = vst.msk [vmem:[#allocation2 + $0x138] sm:$0xff] %vm453_vm8, %v2312_v6  ;;  %v744_v60 = vld [vmem:[#allocation2 + $0x10] sm:$0xff] }
 0x131   : > { %657 = vst.msk [vmem:[#allocation2 + $0x138] sm:$0xff] %vm2815_vm15, %v1913_v41  ;;  %868 = vmatpush.bf16.msra.mxu2 %v803_v9  ;;  %841 = vmatpush.bf16.msra.mxu0 %v804_v12  ;;  %v827_v12 = vld [vmem:[#allocation1 + $0x9] sm:$0xff]  ;;  %vm1010_vm15 = vcmask 1048454  }
 0x132   : > { %492 = vst.msk [vmem:[#allocation2 + $0x60] sm:$0xff] %vm2814_vm14, %v470_v2  ;;  %v783_v50 = vld [vmem:[#allocation2 + $0x148] sm:$0xff]  ;;  %vm1008_vm14 = vcmask 916486  }
 0x133   : > { %498 = vst.msk [vmem:[#allocation2 + $0x60] sm:$0xff] %vm481_vm9, %v1913_v41  ;;  %v817_v22 = vpack.c.bf16 %v785_v14, %v783_v50 }
 0x135   : > { %v387_v19 = vpop.permute.xlu1 %386  ;;  %869 = vmatpush.bf16.msra.mxu2 %v801_v25  ;;  %882 = vmatpush.bf16.msra.mxu3 %v817_v22  ;;  %v750_v25 = vld [vmem:[#allocation2 + $0x40] sm:$0xff] }
 0x136   : > { %v393_v24 = vsel %vm2819_vm5, %v387_v19, %v2238_v59  ;;  %405 = vst.msk [vmem:[#allocation2 + $0x20] sm:$0xff] %vm2813_vm6, %v387_v19  ;;  %v379_v26 = vpop.permute.xlu0 %378  ;;  %v752_v59 = vld [vmem:[#allocation2 + $0x50] sm:$0xff]  ;;  %v777_v0 = vld [vmem:[#allocation2 + $0x118] sm:$0xff] }
 0x137   : > { %406 = vst [vmem:[#allocation2 + $0x28] sm:$0xff] %v393_v24  ;;  %v799_v32 = vpack.c.bf16 %v2193_v29, %v393_v24  ;;  %v800_v29 = vpack.c.bf16 %v752_v59, %v750_v25 }
 0x138   : > { %409 = vst.msk [vmem:[#allocation2 + $0x20] sm:$0xff] %vm2819_vm5, %v1913_v41  ;;  %v781_v38 = vld [vmem:[#allocation2 + $0x138] sm:$0xff] }
 0x139   : > { %401 = vst.msk [vmem:[#allocation2] sm:$0xff] %vm2813_vm6, %v379_v26  ;;  %870 = vmatpush.bf16.msra.mxu2 %v799_v32  ;;  %v815_v55 = vpack.c.bf16 %v781_v38, %v779_v31  ;;  %vm940_vm6 = vcmask 119812  }
 0x13a   : > { %407 = vst.msk [vmem:[#allocation2] sm:$0xff] %vm2819_vm5, %v1913_v41  ;;  %v754_v13 = vld [vmem:[#allocation2 + $0x60] sm:$0xff] }
 0x13b   : > { %v802_v39 = vpack.c.bf16 %v756_v37, %v754_v13  ;;  %883 = vmatpush.bf16.msra.mxu3 %v815_v55 }
 0x13d   : > { %v381_v40 = vpop.permute.xlu1 %380  ;;  %842 = vmatpush.bf16.msra.mxu0 %v802_v39 }
 0x13e   : > { %v391_v43 = vsel %vm2819_vm5, %v379_v26, %v381_v40  ;;  %v385_v21 = vpop.permute.xlu0 %384 }
 0x13f   : > { %402 = vst [vmem:[#allocation2 + $0x8] sm:$0xff] %v391_v43  ;;  %v392_v45 = vsel %vm2819_vm5, %v2287_v61, %v385_v21  ;;  %v746_v46 = vld [vmem:[#allocation2 + $0x20] sm:$0xff]  ;;  %v629_v61 = vpop.permute.xlu2 %628 }
 0x140   : > { %404 = vst [vmem:[#allocation2 + $0x18] sm:$0xff] %v392_v45  ;;  %v797_v47 = vpack.c.bf16 %v392_v45, %v391_v43  ;;  %v798_v51 = vpack.c.bf16 %v748_v44, %v746_v46  ;;  %v640_v14 = vsel %vm453_vm8, %v629_v61, %v2269_v33 }
 0x141   : > { %843 = vmatpush.bf16.msra.mxu0 %v800_v29  ;;  %v742_v54 = vld [vmem:[#allocation2] sm:$0xff] }
 0x142   : > { %871 = vmatpush.bf16.msra.mxu2 %v797_v47  ;;  %v796_v5 = vpack.c.bf16 %v744_v60, %v742_v54 }
 0x145   : > { %v585_v63 = vpop.permute.xlu1 %584  ;;  %872 = vmatmul.bf16.vlgmr.msra.gmra.mxu2 %v826_v53  ;;  %844 = vmatpush.bf16.msra.mxu0 %v798_v51 }
 0x146   : > { %602 = vst.msk [vmem:[#allocation2 + $0x108] sm:$0xff] %vm505_vm2, %v585_v63  ;;  %v637_v18 = vpop.permute.xlu0 %636 }
 0x147   : > { %607 = vst.msk [vmem:[#allocation2 + $0x108] sm:$0xff] %vm2818_vm11, %v1913_v41  ;;  %v642_v3 = vsel %vm453_vm8, %v637_v18, %v2294_v11  ;;  %v587_v57 = vpop.permute.xlu2 %586  ;;  %vm903_vm11 = vcmask 1041544  }
 0x149   : > { %845 = vmatpush.bf16.msra.mxu0 %v796_v5 }
 0x14c   : > { %846 = vmatmul.bf16.vlgmr.msra.gmra.mxu0 %v826_v53 }
 0x14d   : > { %v660_v1 = vpop.permute.xlu1 %659 }
 0x14e   : > { %v672_v49 = vsel %vm671_vm3, %v660_v1, %v2127_v58  ;;  %v633_v2 = vpop.permute.xlu0 %632  ;;  %v775_v4 = vld [vmem:[#allocation2 + $0x108] sm:$0xff]  ;;  %v592_v58 = vsel %vm505_vm2, %v587_v57, %v2306_v52 }
 0x14f   : > { %v813_v7 = vpack.c.bf16 %v777_v0, %v775_v4  ;;  %v816_v8 = vpack.c.bf16 %v672_v49, %v642_v3  ;;  %v641_v9 = vsel %vm453_vm8, %v633_v2, %v2312_v6 }
 0x150   : > { %v814_v50 = vpack.c.bf16 %v641_v9, %v640_v14 }
 0x151   : > { %884 = vmatpush.bf16.msra.mxu3 %v813_v7  ;;  %856 = vmatpush.bf16.msra.mxu1 %v816_v8 }
 0x154   : > { %1817 = vmatmul.msk.bf16.vlgmr.msra.gmra.mxu3 %vm2812_vm0, %v827_v12 }
 0x155   : > { %v583_v11 = vpop.permute.xlu1 %582  ;;  %857 = vmatpush.bf16.msra.mxu1 %v814_v50 }
 0x156   : > { %v591_v22 = vsel %vm505_vm2, %v583_v11, %v585_v63 }
 0x157   : > { %v812_v19 = vpack.c.bf16 %v592_v58, %v591_v22 }
 0x159   : > { %858 = vmatpush.bf16.msra.mxu1 %v812_v19 }
 0x15c   : > { %1816 = vmatmul.msk.bf16.vlgmr.msra.gmra.mxu1 %vm2812_vm0, %v827_v12  ;;  %vm937_vm0 = vcmask 1045628  }
 0x1c8   : > { %v873_v6 = vpop.f32.mrf.mxu2 }
 0x1c9   : > { %v847_v24 = vpop.f32.mrf.mxu0 }
 0x1d0   : > { %v875_v26 = vpop.f32.mrf.mxu2 }
 0x1d1   : > { %v849_v31 = vpop.f32.mrf.mxu0 }
 0x1d7   : > { %v886_v33 = vpop.f32.mrf.mxu3 }
 0x1d8   : > { %v887_v32 = vadd.f32 %v886_v33, %v873_v6 }
 0x1d9   : > { %v860_v37 = vpop.f32.mrf.mxu1 }
 0x1da   : > { %v891_v38 = vmax.f32 %v887_v32, 0.0  ;;  %v861_v55 = vadd.f32 %v860_v37, %v847_v24 }
 0x1dc   : > { %961 = vst [vmem:[#allocation2 + $0x18] sm:$0x3] %v891_v38  ;;  %v890_v13 = vmax.f32 %v861_v55, 0.0  ;;  %v893_v45 = vmul.f32 %v891_v38, %v2063_v34  ;;  %v911_v46 = vrot.slane %v891_v38, 6  ;;  %v1013_v47 = vmul.f32 %v891_v38, %v2102_v48 }
 0x1dd   : > { %v999_v51 = vrot.slane %v891_v38, 2  ;;  %v925_v53 = vmul.f32 %v891_v38, %v2069_v36  ;;  %v981_v54 = vmul.f32 %v891_v38, %v2142_v62  ;;  %v943_v60 = vmul.f32 %v891_v38, %v2040_v23 }
 0x1de   : > { %960 = vst [vmem:[#allocation2 + $0x10] sm:$0x3] %v890_v13  ;;  %v910_v25 = vrot.slane %v890_v13, 6  ;;  %v892_v52 = vmul.f32 %v890_v13, %v2169_v10  ;;  %v924_v59 = vmul.f32 %v890_v13, %v2123_v56  ;;  %v942_v43 = vmul.f32 %v890_v13, %v2088_v42 }
 0x1df   : > { %v888_v39 = vpop.f32.mrf.mxu3  ;;  %v1012_v21 = vmul.f32 %v890_v13, %v2051_v27  ;;  %v929_v63 = vrot.slane %v925_v53, 4  ;;  %v985_v5 = vrot.slane %v981_v54, 4  ;;  %v947_v18 = vrot.slane %v943_v60, 2 }
 0x1e0   : > { %912 = vrot.lane.b32.xlu0 %v910_v25, %s1911_s24  ;;  %896 = vrot.lane.b32.xlu1 %v892_v52, %s1905_s11  ;;  %v928_v40 = vrot.slane %v924_v59, 4  ;;  %v946_v44 = vrot.slane %v942_v43, 2  ;;  %v963_v61 = vmul.f32 %v891_v38, %v2067_v35  ;;  %v962_v0 = vmul.f32 %v890_v13, %v2053_v28 }
 0x1e1   : > { %v862_v29 = vpop.f32.mrf.mxu1  ;;  %v980_v1 = vmul.f32 %v890_v13, %v2057_v30  ;;  %v998_v4 = vrot.slane %v890_v13, 2 }
 0x1e2   : > { %930 = vrot.lane.b32.xlu2 %v928_v40, %s1909_s16  ;;  %v967_v3 = vrot.slane %v963_v61, 6  ;;  %v966_v49 = vrot.slane %v962_v0, 6 }
 0x1e3   : > { %v984_v2 = vrot.slane %v980_v1, 4 }
 0x1e8   : > { %1016 = vrot.lane.b32.xlu0 %v1012_v21, %s1910_s20  ;;  %948 = vrot.lane.b32.xlu1 %v946_v44, %s1906_s12 }
 0x1ea   : > { %898 = vrot.lane.b32.xlu2 %v893_v45, %s1905_s11 }
 0x1f0   : > { %1018 = vrot.lane.b32.xlu0 %v1013_v47, %s1910_s20  ;;  %914 = vrot.lane.b32.xlu1 %v911_v46, %s1911_s24 }
 0x1f2   : > { %1002 = vrot.lane.b32.xlu2 %v999_v51, %s1912_s25  ;;  %v1847_v51 = vld [vmem:[%s2805_s4] sm:$0xff] }
 0x1f8   : > { %932 = vrot.lane.b32.xlu0 %v929_v63, %s1909_s16  ;;  %988 = vrot.lane.b32.xlu1 %v985_v5, %s1908_s14  ;;  %v1030_v63 = vld [vmem:[%s2805_s4 + $0x8] sm:$0xf] }
 0x1f9   : > { %v1046_v5 = vunpack.c.l.b16 %v1030_v63 }
 0x1fa   : > { %950 = vrot.lane.b32.xlu2 %v947_v18, %s1906_s12 }
 0x1fb   : > { %v1048_v18 = vpack.c.b16 %v1046_v5, %v1046_v5 }
 0x200   : > { %970 = vrot.lane.b32.xlu0 %v967_v3, %s1907_s13  ;;  %968 = vrot.lane.b32.xlu1 %v966_v49, %s1907_s13 }
 0x202   : > { %986 = vrot.lane.b32.xlu2 %v984_v2, %s1908_s14 }
 0x208   : > { %1000 = vrot.lane.b32.xlu0 %v998_v4, %s1912_s25 }
 0x23c   : > { %v931_v7 = vpop.permute.xlu2 %930 }
 0x23d   : > { %938 = vst.msk [vmem:[#allocation2] sm:$0x30] %vm937_vm0, %v931_v7  ;;  %vm906_vm0 = vcmask 132096  }
 0x23e   : > { %941 = vst.msk [vmem:[#allocation2] sm:$0x30] %vm940_vm6, %v1913_v41  ;;  %vm955_vm6 = vcmask 1047566  }
 0x244   : > { %v899_v8 = vpop.permute.xlu2 %898 }
 0x24c   : > { %v2388_v9 = vpop.permute.xlu2 %1002 }
 0x24d   : > { %1009 = vst.msk [vmem:[#allocation2 + $0x18] sm:$0xc0] %vm1008_vm14, %v2388_v9  ;;  %vm958_vm14 = vcmask 7174  }
 0x24e   : > { %1011 = vst.msk [vmem:[#allocation2 + $0x18] sm:$0xc0] %vm1010_vm15, %v1913_v41  ;;  %vm1026_vm15 = vcmask 1042296  }
 0x252   : > { %v913_v12 = vpop.permute.xlu0 %912  ;;  %v897_v14 = vpop.permute.xlu1 %896 }
 0x253   : > { %920 = vst.msk [vmem:[#allocation2] sm:$0xc] %vm919_vm12, %v913_v12  ;;  %v900_v57 = vsel %vm2819_vm5, %v897_v14, %v899_v8  ;;  %vm1024_vm12 = vcmask 902144  }
 0x254   : > { %923 = vst.msk [vmem:[#allocation2] sm:$0xc] %vm922_vm13, %v1913_v41  ;;  %v951_v50 = vpop.permute.xlu2 %950  ;;  %vm996_vm13 = vcmask 1046412  }
 0x255   : > { %904 = vst.msk [vmem:[#allocation2] sm:$0x3] %vm903_vm11, %v897_v14  ;;  %vm994_vm11 = vcmask 922628  }
 0x256   : > { %905 = vst [vmem:[#allocation2 + $0x8] sm:$0x3] %v900_v57 }
 0x257   : > { %907 = vst.msk [vmem:[#allocation2] sm:$0x3] %vm906_vm0, %v1913_v41  ;;  %vm1056_vm0 = vcmask 1040384  }
 0x25a   : > { %v1017_v11 = vpop.permute.xlu0 %1016  ;;  %v949_v58 = vpop.permute.xlu1 %948 }
 0x25b   : > { %v952_v22 = vsel %vm533_vm1, %v949_v58, %v951_v50  ;;  %956 = vst.msk [vmem:[#allocation2] sm:$0xc0] %vm955_vm6, %v949_v58  ;;  %vm976_vm6 = vcmask 1035266  }
 0x25c   : > { %957 = vst [vmem:[#allocation2 + $0x8] sm:$0xc0] %v952_v22  ;;  %v987_v31 = vpop.permute.xlu2 %986 }
 0x25d   : > { %959 = vst.msk [vmem:[#allocation2] sm:$0xc0] %vm958_vm14, %v1913_v41  ;;  %vm978_vm14 = vcmask 1044474  }
 0x262   : > { %v1019_v19 = vpop.permute.xlu0 %1018  ;;  %v915_v6 = vpop.permute.xlu1 %914 }
 0x263   : > { %v1020_v24 = vsel %vm362_vm10, %v1017_v11, %v1019_v19  ;;  %1025 = vst.msk [vmem:[#allocation2 + $0x28] sm:$0x3] %vm1024_vm12, %v1019_v19  ;;  %v916_v26 = vsel %vm426_vm7, %v913_v12, %v915_v6  ;;  %vm1049_vm12 = vcmask 146432  }
 0x264   : > { %1023 = vst [vmem:[#allocation2 + $0x20] sm:$0x3] %v1020_v24  ;;  %v1031_v53 = vld [vmem:[#allocation2] sm:$0xff] }
 0x265   : > { %1027 = vst.msk [vmem:[#allocation2 + $0x28] sm:$0x3] %vm1026_vm15, %v1913_v41 }
 0x266   : > { %921 = vst [vmem:[#allocation2 + $0x8] sm:$0xc] %v916_v26 }
 0x26a   : > { %v933_v33 = vpop.permute.xlu0 %932  ;;  %v989_v32 = vpop.permute.xlu1 %988 }
 0x26b   : > { %v934_v37 = vsel %vm481_vm9, %v931_v7, %v933_v33  ;;  %v990_v38 = vsel %vm453_vm8, %v987_v31, %v989_v32  ;;  %995 = vst.msk [vmem:[#allocation2 + $0x18] sm:$0x30] %vm994_vm11, %v989_v32  ;;  %v1035_v55 = vld [vmem:[#allocation2 + $0x20] sm:$0x3] }
 0x26c   : > { %939 = vst [vmem:[#allocation2 + $0x8] sm:$0x30] %v934_v37  ;;  %v1039_v13 = vpack.c.bf16 %v1035_v55, %v1035_v55  ;;  %v1036_v25 = vld [vmem:[#allocation2 + $0x28] sm:$0x3] }
 0x26d   : > { %993 = vst [vmem:[#allocation2 + $0x10] sm:$0x30] %v990_v38  ;;  %v1040_v52 = vpack.c.bf16 %v1036_v25, %v1036_v25 }
 0x26e   : > { %997 = vst.msk [vmem:[#allocation2 + $0x18] sm:$0x30] %vm996_vm13, %v1913_v41  ;;  %v1058_v59 = vsel %vm1056_vm0, %v1039_v13, 0 }
 0x26f   : > { %1069 = vmatpush.bf16.msrb.mxu1 %v1058_v59  ;;  %v1061_v39 = vsel %vm1056_vm0, %v1040_v52, 0 }
 0x270   : > { %1087 = vmatpush.bf16.msrb.mxu3 %v1061_v39 }
 0x272   : > { %v971_v40 = vpop.permute.xlu0 %970  ;;  %v969_v29 = vpop.permute.xlu1 %968 }
 0x273   : > { %977 = vst.msk [vmem:[#allocation2 + $0x18] sm:$0xc] %vm976_vm6, %v971_v40  ;;  %v972_v43 = vsel %vm505_vm2, %v969_v29, %v971_v40  ;;  %v1032_v45 = vld [vmem:[#allocation2 + $0x8] sm:$0xff] }
 0x274   : > { %979 = vst.msk [vmem:[#allocation2 + $0x18] sm:$0xc] %vm978_vm14, %v1913_v41 }
 0x275   : > { %975 = vst [vmem:[#allocation2 + $0x10] sm:$0xc] %v972_v43 }
 0x27a   : > { %v1001_v21 = vpop.permute.xlu0 %1000 }
 0x27b   : > { %v1004_v44 = vsel %vm671_vm3, %v1001_v21, %v2388_v9  ;;  %v1034_v46 = vld [vmem:[#allocation2 + $0x18] sm:$0xff] }
 0x27c   : > { %1007 = vst [vmem:[#allocation2 + $0x10] sm:$0xc0] %v1004_v44  ;;  %v1038_v47 = vpack.c.bf16 %v1034_v46, %v1032_v45 }
 0x27e   : > { %1088 = vmatpush.bf16.msrb.mxu3 %v1038_v47 }
 0x281   : > { %1824 = vmatmul.msk.bf16.vlgmr.msrb.gmra.mxu3 %vm1049_vm12, %v1847_v51 }
 0x283   : > { %v1033_v54 = vld [vmem:[#allocation2 + $0x10] sm:$0xff] }
 0x284   : > { %v1037_v60 = vpack.c.bf16 %v1033_v54, %v1031_v53 }
 0x286   : > { %1070 = vmatpush.bf16.msrb.mxu1 %v1037_v60 }
 0x289   : > { %1822 = vmatmul.msk.bf16.vlgmr.msrb.gmra.mxu1 %vm1049_vm12, %v1847_v51 }
 0x291   : > { %1825 = vmatmul.msk.bf16.gmra.mxu3 %vm1049_vm12, %v1048_v18 }
 0x299   : > { %1823 = vmatmul.msk.bf16.gmra.mxu1 %vm1049_vm12, %v1048_v18  ;;  %v1895_v18 = vld [vmem:[%s1996_s23 + $0x8] sm:$0xff] }
 0x304   : > { %v1090_v61 = vpop.f32.mrf.mxu3 }
 0x305   : > { %v1827_v0 = vmul.f32 -1.442695, %v1090_v61 }
 0x306   : > { %v1072_v1 = vpop.f32.mrf.mxu1 }
 0x307   : > { %1871 = vpow2.f32 %v1827_v0  ;;  %v1826_v3 = vmul.f32 -1.442695, %v1072_v1 }
 0x309   : > { %1873 = vpow2.f32 %v1826_v3 }
 0x30c   : > { %v1092_v49 = vpop.f32.mrf.mxu3 }
 0x30d   : > { %v1872_v2 = vpop.eup %1871  ;;  %v1829_v4 = vmul.f32 -1.442695, %v1092_v49 }
 0x30e   : > { %v1118_v7 = vadd.f32 1.0, %v1872_v2  ;;  %v1074_v8 = vpop.f32.mrf.mxu1 }
 0x30f   : > { %v1874_v9 = vpop.eup %1873  ;;  %1875 = vpow2.f32 %v1829_v4  ;;  %v1828_v12 = vmul.f32 -1.442695, %v1074_v8 }
 0x310   : > { %1877 = vrcp.f32 %v1118_v7  ;;  %v1117_v14 = vadd.f32 1.0, %v1874_v9  ;;  %v1149_v32 = vand.u32 2147483648, %v1118_v7  ;;  %vm1143_vm15 = vweird.f32 %v1118_v7  ;;  %v1896_v9 = vld [vmem:[%s1996_s23] sm:$0xff] }
 0x311   : > { %1879 = vpow2.f32 %v1828_v12  ;;  %v1147_v13 = vand.u32 2147483647, %v1118_v7 }
 0x312   : > { %1881 = vrcp.f32 %v1117_v14  ;;  %v1134_v52 = vand.u32 2147483648, %v1117_v14  ;;  %v1150_v29 = vor.u32 1.1754944e-38, %v1149_v32  ;;  %v1132_v44 = vand.u32 2147483647, %v1117_v14 }
 0x313   : > { %vm1148_vm6 = vcmp.eq.f32.partialorder %v1147_v13, 8.507059e+37  ;;  %vm1128_vm14 = vweird.f32 %v1117_v14 }
 0x314   : > { %v1095_v57 = vpop.f32.mrf.mxu3  ;;  %v1135_v63 = vor.u32 1.1754944e-38, %v1134_v52 }
 0x315   : > { %v1876_v50 = vpop.eup %1875  ;;  %v1831_v11 = vmul.f32 -1.442695, %v1095_v57 }
 0x316   : > { %v1878_v58 = vpop.eup %1877  ;;  %v2413_v22 = vadd.f32 1.0, %v1876_v50  ;;  %v1077_v19 = vpop.f32.mrf.mxu1 }
 0x317   : > { %v1880_v6 = vpop.eup %1879  ;;  %v1139_v24 = vmul.f32 %v1878_v58, %v1118_v7  ;;  %1883 = vpow2.f32 %v1831_v11  ;;  %v1830_v26 = vmul.f32 -1.442695, %v1077_v19  ;;  %vm1144_vm11 = vweird.f32 %v1878_v58 }
 0x318   : > { %1885 = vrcp.f32 %v2413_v22  ;;  %v1882_v31 = vpop.eup %1881  ;;  %v2416_v37 = vadd.f32 1.0, %v1880_v6  ;;  %vm1145_vm13 = vmor %vm1143_vm15, %vm1144_vm11  ;;  %v1177_v1 = vand.u32 2147483647, %v2413_v22  ;;  %v1179_v3 = vand.u32 2147483648, %v2413_v22 }
 0x319   : > { %v1140_v33 = vsub.f32 1.0, %v1139_v24  ;;  %1887 = vpow2.f32 %v1830_v26  ;;  %v1124_v38 = vmul.f32 %v1882_v31, %v1117_v14  ;;  %vm1129_vm0 = vweird.f32 %v1882_v31 }
 0x31a   : > { %1889 = vrcp.f32 %v2416_v37  ;;  %vm1130_vm12 = vmor %vm1128_vm14, %vm1129_vm0  ;;  %vm1133_vm15 = vcmp.eq.f32.partialorder %v1132_v44, 8.507059e+37  ;;  %vm1173_vm11 = vweird.f32 %v2413_v22  ;;  %v1164_v57 = vand.u32 2147483648, %v2416_v37 }
 0x31b   : > { %v1141_v55 = vmul.f32 %v1878_v58, %v1140_v33  ;;  %v1125_v25 = vsub.f32 1.0, %v1124_v38  ;;  %vm1178_vm0 = vcmp.eq.f32.partialorder %v1177_v1, 8.507059e+37  ;;  %v1180_v11 = vor.u32 1.1754944e-38, %v1179_v3 }
 0x31c   : > { %v1097_v59 = vpop.f32.mrf.mxu3 }
 0x31d   : > { %v1884_v39 = vpop.eup %1883  ;;  %v1142_v40 = vadd.f32 %v1878_v58, %v1141_v55  ;;  %v1126_v21 = vmul.f32 %v1882_v31, %v1125_v25  ;;  %v1165_v55 = vor.u32 1.1754944e-38, %v1164_v57 }
 0x31e   : > { %v1886_v43 = vpop.eup %1885  ;;  %v2419_v45 = vadd.f32 1.0, %v1884_v39  ;;  %v1079_v46 = vpop.f32.mrf.mxu1 }
 0x31f   : > { %v1888_v47 = vpop.eup %1887  ;;  %v1146_v51 = vsel %vm1145_vm13, %v1878_v58, %v1142_v40  ;;  %v1169_v53 = vmul.f32 %v1886_v43, %v2413_v22  ;;  %v1127_v60 = vadd.f32 %v1882_v31, %v1126_v21  ;;  %vm1174_vm13 = vweird.f32 %v1886_v43 }
 0x320   : > { %v1151_v54 = vsel %vm1148_vm6, %v1150_v29, %v1146_v51  ;;  %1891 = vrcp.f32 %v2419_v45  ;;  %v1890_v5 = vpop.eup %1889  ;;  %v2430_v4 = vadd.f32 1.0, %v1888_v47  ;;  %v1162_v58 = vand.u32 2147483647, %v2416_v37  ;;  %vm1175_vm6 = vmor %vm1173_vm11, %vm1174_vm13 }
 0x321   : > { %v2424_v61 = vmul.f32 %v1895_v18, %v1151_v54  ;;  %v1170_v0 = vsub.f32 1.0, %v1169_v53  ;;  %v1131_v49 = vsel %vm1130_vm12, %v1882_v31, %v1127_v60  ;;  %v1154_v2 = vmul.f32 %v1890_v5, %v2416_v37 }
 0x322   : > { %v1136_v7 = vsel %vm1133_vm15, %v1135_v63, %v1131_v49  ;;  %1893 = vrcp.f32 %v2430_v4  ;;  %vm1159_vm14 = vweird.f32 %v1890_v5  ;;  %v1207_v6 = vand.u32 2147483647, %v2419_v45 }
 0x323   : > { %v1171_v8 = vmul.f32 %v1886_v43, %v1170_v0  ;;  %1473 = vrot.lane.b32.xlu0 %v2424_v61, %s1912_s25  ;;  %v2436_v12 = vmul.f32 %v1896_v9, %v1136_v7  ;;  %v1155_v14 = vsub.f32 1.0, %v1154_v2  ;;  %vm1158_vm12 = vweird.f32 %v2416_v37 }
 0x324   : > { %v1209_v33 = vand.u32 2147483648, %v2419_v45  ;;  %vm1203_vm15 = vweird.f32 %v2419_v45  ;;  %vm1160_vm11 = vmor %vm1158_vm12, %vm1159_vm14  ;;  %v1502_v37 = vmul.f32 %v2424_v61, %v2102_v48  ;;  %vm2456_vm5 = vcmp.eq.f32.partialorder %v1207_v6, 8.507059e+37 }
 0x325   : > { %v1172_v50 = vadd.f32 %v1886_v43, %v1171_v8  ;;  %v1156_v22 = vmul.f32 %v1890_v5, %v1155_v14  ;;  %1471 = vrot.lane.b32.xlu2 %v2436_v12, %s1912_s25  ;;  %v1387_v24 = vmul.f32 %v2436_v12, %v2053_v28  ;;  %vm1188_vm14 = vweird.f32 %v2430_v4 }
 0x326   : > { %v1892_v19 = vpop.eup %1891  ;;  %v1194_v44 = vand.u32 2147483648, %v2430_v4  ;;  %v1501_v46 = vmul.f32 %v2436_v12, %v2051_v27  ;;  %v1192_v53 = vand.u32 2147483647, %v2430_v4  ;;  %v1430_v0 = vmul.f32 %v2424_v61, %v2142_v62 }
 0x327   : > { %v1176_v26 = vsel %vm1175_vm6, %v1886_v43, %v1172_v50  ;;  %v1199_v31 = vmul.f32 %v1892_v19, %v2419_v45  ;;  %v1157_v38 = vadd.f32 %v1890_v5, %v1156_v22  ;;  %1399 = vrot.lane.b32.xlu1 %v1387_v24, %s1907_s13  ;;  %vm1204_vm13 = vweird.f32 %v1892_v19 }
 0x328   : > { %v1181_v32 = vsel %vm1178_vm0, %v1180_v11, %v1176_v26  ;;  %v1894_v52 = vpop.eup %1893  ;;  %vm1163_vm6 = vcmp.eq.f32.partialorder %v1162_v58, 8.507059e+37  ;;  %v1210_v43 = vor.u32 1.1754944e-38, %v1209_v33  ;;  %vm1205_vm0 = vmor %vm1203_vm15, %vm1204_vm13  ;;  %v1195_v63 = vor.u32 1.1754944e-38, %v1194_v44 }
 0x329   : > { %v2452_v13 = vmul.f32 %v1181_v32, %v2006_v17  ;;  %v1200_v25 = vsub.f32 1.0, %v1199_v31  ;;  %v1161_v59 = vsel %vm1160_vm11, %v1890_v5, %v1157_v38  ;;  %v1184_v21 = vmul.f32 %v1894_v52, %v2430_v4 }
 0x32a   : > { %v1166_v40 = vsel %vm1163_vm6, %v1165_v55, %v1161_v59  ;;  %vm1189_vm12 = vweird.f32 %v1894_v52  ;;  %vm1193_vm11 = vcmp.eq.f32.partialorder %v1192_v53, 8.507059e+37  ;;  %v1429_v49 = vmul.f32 %v2436_v12, %v2057_v30 }
 0x32b   : > { %v1201_v29 = vmul.f32 %v1892_v19, %v1200_v25  ;;  %1515 = vrot.lane.b32.xlu0 %v1502_v37, %s1910_s20  ;;  %v2463_v17 = vmul.f32 %v1166_v40, %v2019_v20  ;;  %v1185_v51 = vsub.f32 1.0, %v1184_v21  ;;  %v1339_v20 = vmul.f32 %v2436_v12, %v2088_v42  ;;  %vm1190_vm15 = vmor %vm1188_vm14, %vm1189_vm12 }
 0x32c   : > { %v1388_v4 = vmul.f32 %v2424_v61, %v2067_v35  ;;  %v1340_v7 = vmul.f32 %v2424_v61, %v2040_v23  ;;  %v1298_v14 = vmul.f32 %v2424_v61, %v2069_v36  ;;  %v1504_v58 = vmul.f32 %v2452_v13, %v2102_v48 }
 0x32d   : > { %v1202_v47 = vadd.f32 %v1892_v19, %v1201_v29  ;;  %1513 = vrot.lane.b32.xlu2 %v1501_v46, %s1910_s20  ;;  %v1186_v45 = vmul.f32 %v1894_v52, %v1185_v51  ;;  %v1503_v8 = vmul.f32 %v2463_v17, %v2051_v27  ;;  %v1299_v9 = vmul.f32 %v2463_v17, %v2123_v56 }
 0x32e   : > { %v1431_v57 = vmul.f32 %v2463_v17, %v2057_v30  ;;  %v1389_v50 = vmul.f32 %v2463_v17, %v2053_v28  ;;  %v1432_v22 = vmul.f32 %v2452_v13, %v2142_v62  ;;  %v1390_v24 = vmul.f32 %v2452_v13, %v2067_v35 }
 0x32f   : > { %v1206_v54 = vsel %vm1205_vm0, %v1892_v19, %v1202_v47  ;;  %1351 = vrot.lane.b32.xlu1 %v1339_v20, %s1906_s12  ;;  %v1187_v18 = vadd.f32 %v1894_v52, %v1186_v45  ;;  %v1222_v59 = vmul.f32 %v2452_v13, %v2063_v34  ;;  %v1220_v44 = vmul.f32 %v2424_v61, %v2063_v34 }
 0x330   : > { %v1211_v60 = vsel %vm2456_vm5, %v1210_v43, %v1206_v54  ;;  %vm2822_vm5 = vcmask 1048568   ;;  %vm2823_vm13 = vcmask 1048440   ;;  %vm2824_vm6 = vcmask 1047560  }
 0x331   : > { %v2479_v5 = vmul.f32 %v1211_v60, %v2003_v16  ;;  %v1191_v1 = vsel %vm1190_vm15, %v1894_v52, %v1187_v18  ;;  %v1297_v16 = vmul.f32 %v2436_v12, %v2123_v56  ;;  %vm2825_vm0 = vcmask 1048456   ;;  %vm2828_vm15 = vmmov %vm2824_vm6 }
 0x332   : > { %v1196_v3 = vsel %vm1193_vm11, %v1195_v63, %v1191_v1  ;;  %vm2826_vm14 = vcmask 1047672   ;;  %vm2827_vm12 = vcmask 1047680   ;;  %vm2829_vm11 = vmmov %vm2823_vm13 }
 0x333   : > { %1443 = vrot.lane.b32.xlu0 %v1430_v0, %s1908_s14  ;;  %v2487_v2 = vmul.f32 %v1196_v3, %v2000_v15  ;;  %v1341_v15 = vmul.f32 %v2463_v17, %v2088_v42  ;;  %v1506_v31 = vmul.f32 %v2479_v5, %v2102_v48  ;;  %v1344_v32 = vmul.f32 %v2479_v5, %v2040_v23 }
 0x334   : > { %v1224_v25 = vmul.f32 %v2479_v5, %v2063_v34 }
 0x335   : > { %1441 = vrot.lane.b32.xlu2 %v1429_v49, %s1908_s14  ;;  %v1505_v11 = vmul.f32 %v2487_v2, %v2051_v27  ;;  %v1433_v19 = vmul.f32 %v2487_v2, %v2057_v30  ;;  %v1342_v27 = vmul.f32 %v2452_v13, %v2040_v23  ;;  %v1391_v6 = vmul.f32 %v2487_v2, %v2053_v28 }
 0x336   : > { %v1300_v30 = vmul.f32 %v2452_v13, %v2069_v36  ;;  %v1219_v28 = vmul.f32 %v2436_v12, %v2169_v10  ;;  %v1343_v26 = vmul.f32 %v2487_v2, %v2088_v42  ;;  %v1301_v38 = vmul.f32 %v2487_v2, %v2123_v56 }
 0x337   : > { %1309 = vrot.lane.b32.xlu1 %v1297_v16, %s1909_s16  ;;  %v1302_v42 = vmul.f32 %v2479_v5, %v2069_v36  ;;  %v1223_v48 = vmul.f32 %v2487_v2, %v2169_v10  ;;  %v1434_v23 = vmul.f32 %v2479_v5, %v2142_v62  ;;  %v1392_v62 = vmul.f32 %v2479_v5, %v2067_v35 }
 0x338   : > { %v1221_v35 = vmul.f32 %v2463_v17, %v2169_v10  ;;  %v1611_v10 = vpack.c.bf16 %v2463_v17, %v2436_v12 }
 0x33b   : > { %1271 = vrot.lane.b32.xlu0 %v2463_v17, %s1911_s24 }
 0x33d   : > { %1401 = vrot.lane.b32.xlu2 %v1388_v4, %s1907_s13 }
 0x33f   : > { %1475 = vrot.lane.b32.xlu1 %v2463_v17, %s1912_s25 }
 0x343   : > { %1355 = vrot.lane.b32.xlu0 %v1341_v15, %s1906_s12 }
 0x345   : > { %1353 = vrot.lane.b32.xlu2 %v1340_v7, %s1906_s12 }
 0x347   : > { %1517 = vrot.lane.b32.xlu1 %v1503_v8, %s1910_s20 }
 0x34b   : > { %1313 = vrot.lane.b32.xlu0 %v1299_v9, %s1909_s16 }
 0x34d   : > { %1311 = vrot.lane.b32.xlu2 %v1298_v14, %s1909_s16 }
 0x34f   : > { %1445 = vrot.lane.b32.xlu1 %v1431_v57, %s1908_s14 }
 0x353   : > { %1479 = vrot.lane.b32.xlu0 %v2487_v2, %s1912_s25 }
 0x355   : > { %1477 = vrot.lane.b32.xlu2 %v2452_v13, %s1912_s25 }
 0x357   : > { %1403 = vrot.lane.b32.xlu1 %v1389_v50, %s1907_s13 }
 0x35b   : > { %1521 = vrot.lane.b32.xlu0 %v1505_v11, %s1910_s20 }
 0x35d   : > { %1519 = vrot.lane.b32.xlu2 %v1504_v58, %s1910_s20 }
 0x35f   : > { %1273 = vrot.lane.b32.xlu1 %v2452_v13, %s1911_s24 }
 0x363   : > { %1449 = vrot.lane.b32.xlu0 %v1433_v19, %s1908_s14 }
 0x365   : > { %1447 = vrot.lane.b32.xlu2 %v1432_v22, %s1908_s14 }
 0x367   : > { %1357 = vrot.lane.b32.xlu1 %v1342_v27, %s1906_s12 }
 0x36b   : > { %1407 = vrot.lane.b32.xlu0 %v1391_v6, %s1907_s13 }
 0x36d   : > { %1275 = vrot.lane.b32.xlu2 %v2487_v2, %s1911_s24 }
 0x36f   : > { %1315 = vrot.lane.b32.xlu1 %v1300_v30, %s1909_s16 }
 0x373   : > { %1277 = vrot.lane.b32.xlu0 %v2479_v5, %s1911_s24 }
 0x375   : > { %1405 = vrot.lane.b32.xlu2 %v1390_v24, %s1907_s13 }
 0x377   : > { %1481 = vrot.lane.b32.xlu1 %v2479_v5, %s1912_s25 }
 0x37b   : > { %1231 = vrot.lane.b32.xlu0 %v1219_v28, %s1905_s11 }
 0x37d   : > { %1359 = vrot.lane.b32.xlu2 %v1343_v26, %s1906_s12 }
 0x37f   : > { %v1472_v33 = vpop.permute.xlu2 %1471  ;;  %1523 = vrot.lane.b32.xlu1 %v1506_v31, %s1910_s20 }
 0x383   : > { %1361 = vrot.lane.b32.xlu0 %v1344_v32, %s1906_s12 }
 0x385   : > { %1317 = vrot.lane.b32.xlu2 %v1301_v38, %s1909_s16 }
 0x387   : > { %v1514_v55 = vpop.permute.xlu2 %1513  ;;  %1267 = vrot.lane.b32.xlu1 %v2436_v12, %s1911_s24  ;;  %v1612_v12 = vpack.c.bf16 %v2452_v13, %v2424_v61 }
 0x38b   : > { %1319 = vrot.lane.b32.xlu0 %v1302_v42, %s1909_s16 }
 0x38d   : > { %1239 = vrot.lane.b32.xlu2 %v1223_v48, %s1905_s11 }
 0x38f   : > { %v1442_v56 = vpop.permute.xlu2 %1441  ;;  %1451 = vrot.lane.b32.xlu1 %v1434_v23, %s1908_s14 }
 0x393   : > { %1241 = vrot.lane.b32.xlu0 %v1224_v25, %s1905_s11 }
 0x395   : > { %v1474_v37 = vpop.permute.xlu0 %1473  ;;  %1269 = vrot.lane.b32.xlu2 %v2424_v61, %s1911_s24 }
 0x396   : > { %v2587_v36 = vsel %vm671_vm3, %v1472_v33, %v1474_v37  ;;  %1493 = vst.msk [vmem:[#allocation2 + $0x158] sm:$0xff] %vm671_vm3, %v1474_v37 }
 0x397   : > { %1498 = vst.msk [vmem:[#allocation2 + $0x158] sm:$0xff] %vm687_vm4, %v1913_v41  ;;  %v1402_v52 = vpop.permute.xlu2 %1401  ;;  %1409 = vrot.lane.b32.xlu1 %v1392_v62, %s1907_s13 }
 0x398   : > { %1421 = vst.msk [vmem:[#allocation2 + $0xf8] sm:$0xff] %vm505_vm2, %v1402_v52 }
 0x399   : > { %1426 = vst.msk [vmem:[#allocation2 + $0xf8] sm:$0xff] %vm2822_vm5, %v1913_v41  ;;  %v1400_v39 = vpop.permute.xlu1 %1399  ;;  %vm2830_vm5 = vmmov %vm2826_vm14 }
 0x39a   : > { %v1411_v40 = vsel %vm505_vm2, %v1400_v39, %v1402_v52 }
 0x39b   : > { %1237 = vrot.lane.b32.xlu0 %v1222_v59, %s1905_s11  ;;  %v1613_v29 = vpack.c.bf16 %v1411_v40, %v2487_v2 }
 0x39d   : > { %v1516_v43 = vpop.permute.xlu0 %1515  ;;  %1235 = vrot.lane.b32.xlu2 %v1221_v35, %s1905_s11  ;;  %1645 = vmatpush.bf16.msrb.mxu0 %v1613_v29 }
 0x39e   : > { %v2608_v21 = vsel %vm362_vm10, %v1514_v55, %v1516_v43  ;;  %1535 = vst.msk [vmem:[#allocation2 + $0x188] sm:$0xff] %vm362_vm10, %v1516_v43 }
 0x39f   : > { %1540 = vst.msk [vmem:[#allocation2 + $0x188] sm:$0xff] %vm2823_vm13, %v1913_v41  ;;  %v1354_v46 = vpop.permute.xlu2 %1353  ;;  %1233 = vrot.lane.b32.xlu1 %v1220_v44, %s1905_s11  ;;  %vm2831_vm13 = vmmov %vm2825_vm0 }
 0x3a0   : > { %v1576_v47 = vld [vmem:[#allocation2 + $0xf8] sm:$0xff] }
 0x3a1   : > { %v1352_v51 = vpop.permute.xlu1 %1351  ;;  %v1614_v53 = vpack.c.bf16 %v1576_v47, %v2479_v5  ;;  %1646 = vmatpush.bf16.msrb.mxu0 %v1611_v10 }
 0x3a2   : > { %v2621_v20 = vsel %vm533_vm1, %v1352_v51, %v1354_v46  ;;  %1372 = vst.msk [vmem:[#allocation2 + $0x90] sm:$0xff] %vm2824_vm6, %v1352_v51  ;;  %vm2832_vm6 = vmmov %vm2827_vm12 }
 0x3a3   : > { %1673 = vmatpush.bf16.msra.mxu1 %v1614_v53  ;;  %1378 = vst.msk [vmem:[#allocation2 + $0x90] sm:$0xff] %vm533_vm1, %v1913_v41 }
 0x3a5   : > { %v1444_v34 = vpop.permute.xlu0 %1443 }
 0x3a6   : > { %v2627_v54 = vsel %vm453_vm8, %v1442_v56, %v1444_v34  ;;  %1463 = vst.msk [vmem:[#allocation2 + $0x128] sm:$0xff] %vm453_vm8, %v1444_v34 }
 0x3a7   : > { %1468 = vst.msk [vmem:[#allocation2 + $0x128] sm:$0xff] %vm2825_vm0, %v1913_v41  ;;  %1674 = vmatpush.bf16.msra.mxu1 %v1612_v12  ;;  %v1312_v17 = vpop.permute.xlu2 %1311  ;;  %vm2833_vm0 = vcmask 1048568  }
 0x3a9   : > { %v1310_v45 = vpop.permute.xlu1 %1309 }
 0x3aa   : > { %v2635_v60 = vsel %vm481_vm9, %v1310_v45, %v1312_v17  ;;  %1330 = vst.msk [vmem:[#allocation2 + $0x60] sm:$0xff] %vm2826_vm14, %v1310_v45  ;;  %vm2834_vm14 = vmmov %vm2828_vm15  ;;  %v1563_v37 = vld [vmem:[#allocation2 + $0x90] sm:$0xff] }
 0x3ab   : > { %1336 = vst.msk [vmem:[#allocation2 + $0x60] sm:$0xff] %vm481_vm9, %v1913_v41 }
 0x3ad   : > { %v1272_v63 = vpop.permute.xlu0 %1271 }
 0x3ae   : > { %1290 = vst.msk [vmem:[#allocation2 + $0x40] sm:$0xff] %vm2827_vm12, %v1272_v63  ;;  %vm2835_vm12 = vmmov %vm2830_vm5 }
 0x3af   : > { %1295 = vst.msk [vmem:[#allocation2 + $0x40] sm:$0xff] %vm426_vm7, %v1913_v41  ;;  %v1478_v61 = vpop.permute.xlu2 %1477 }
 0x3b0   : > { %1495 = vst.msk [vmem:[#allocation2 + $0x168] sm:$0xff] %vm671_vm3, %v1478_v61 }
 0x3b1   : > { %1499 = vst.msk [vmem:[#allocation2 + $0x168] sm:$0xff] %vm687_vm4, %v1913_v41  ;;  %v1476_v13 = vpop.permute.xlu1 %1475 }
 0x3b2   : > { %v2647_v5 = vsel %vm671_vm3, %v1476_v13, %v1478_v61  ;;  %v1557_v52 = vld [vmem:[#allocation2 + $0x60] sm:$0xff]  ;;  %v1701_v61 = vld [vmem:[%s2807_s6] sm:$0xff] }
 0x3b3   : > { %v1717_v13 = vld [vmem:[%s2808_s7] sm:$0xff] }
 0x3b5   : > { %v1356_v18 = vpop.permute.xlu0 %1355 }
 0x3b6   : > { %1374 = vst.msk [vmem:[#allocation2 + $0xa0] sm:$0xff] %vm2828_vm15, %v1356_v18  ;;  %vm2836_vm15 = vcmask 1047688   ;;  %v1553_v44 = vld [vmem:[#allocation2 + $0x40] sm:$0xff] }
 0x3b7   : > { %1379 = vst.msk [vmem:[#allocation2 + $0xa0] sm:$0xff] %vm533_vm1, %v1913_v41  ;;  %v1520_v0 = vpop.permute.xlu2 %1519 }
 0x3b8   : > { %1537 = vst.msk [vmem:[#allocation2 + $0x198] sm:$0xff] %vm362_vm10, %v1520_v0 }
 0x3b9   : > { %1541 = vst.msk [vmem:[#allocation2 + $0x198] sm:$0xff] %vm2829_vm11, %v1913_v41  ;;  %v1518_v1 = vpop.permute.xlu1 %1517  ;;  %vm2837_vm11 = vcmask 138240  }
 0x3ba   : > { %v2656_v3 = vsel %vm362_vm10, %v1518_v1, %v1520_v0  ;;  %v1702_v0 = vld [vmem:[%s2807_s6 + $0x8] sm:$0xf] }
 0x3bb   : > { %v1623_v17 = vpack.c.bf16 %v2656_v3, %v2608_v21  ;;  %v1914_v21 = vmov 0  }
 0x3bc   : > { %1868 = vset.pattern.permute.xlu1 %v1914_v21  ;;  %1870 = vset.pattern.permute.xlu0 %v1914_v21 }
 0x3bd   : > { %v1314_v49 = vpop.permute.xlu0 %1313  ;;  %1705 = vperm.xlu1 %1868, %v1701_v61   ;;  %1721 = vperm.xlu0 %1870, %v1717_v13  }
 0x3be   : > { %1332 = vst.msk [vmem:[#allocation2 + $0x70] sm:$0xff] %vm2830_vm5, %v1314_v49  ;;  %v1565_v32 = vld [vmem:[#allocation2 + $0xa0] sm:$0xff]  ;;  %vm2838_vm5 = vmmov %vm2836_vm15  ;;  %1869 = vset.pattern.permute.xlu2 %v1914_v21 }
 0x3bf   : > { %1337 = vst.msk [vmem:[#allocation2 + $0x70] sm:$0xff] %vm481_vm9, %v1913_v41  ;;  %v1448_v2 = vpop.permute.xlu2 %1447  ;;  %1710 = vperm.xlu2 %1869, %v1702_v0  }
 0x3c0   : > { %1465 = vst.msk [vmem:[#allocation2 + $0x138] sm:$0xff] %vm453_vm8, %v1448_v2 }
 0x3c1   : > { %1469 = vst.msk [vmem:[#allocation2 + $0x138] sm:$0xff] %vm2831_vm13, %v1913_v41  ;;  %v1446_v16 = vpop.permute.xlu1 %1445  ;;  %vm2839_vm13 = vmmov %vm2837_vm11 }
 0x3c2   : > { %v2665_v4 = vsel %vm453_vm8, %v1446_v16, %v1448_v2  ;;  %v1596_v2 = vld [vmem:[#allocation2 + $0x198] sm:$0xff] }
 0x3c3   : > { %v1617_v15 = vpack.c.bf16 %v2665_v4, %v2627_v54  ;;  %v1582_v54 = vld [vmem:[#allocation2 + $0x128] sm:$0xff] }
 0x3c5   : > { %v1480_v7 = vpop.permute.xlu0 %1479 }
 0x3c6   : > { %v1559_v59 = vld [vmem:[#allocation2 + $0x70] sm:$0xff] }
 0x3c7   : > { %v1276_v8 = vpop.permute.xlu2 %1275  ;;  %v1605_v40 = vpack.c.bf16 %v1559_v59, %v1557_v52 }
 0x3c8   : > { %1292 = vst.msk [vmem:[#allocation2 + $0x50] sm:$0xff] %vm2832_vm6, %v1276_v8  ;;  %vm2843_vm6 = vmmov %vm2837_vm11  ;;  %v1584_v4 = vld [vmem:[#allocation2 + $0x138] sm:$0xff] }
 0x3c9   : > { %1296 = vst.msk [vmem:[#allocation2 + $0x50] sm:$0xff] %vm426_vm7, %v1913_v41  ;;  %v1404_v9 = vpop.permute.xlu1 %1403 }
 0x3cd   : > { %v1522_v14 = vpop.permute.xlu0 %1521 }
 0x3cf   : > { %v1406_v57 = vpop.permute.xlu2 %1405 }
 0x3d0   : > { %v2673_v50 = vsel %vm505_vm2, %v1404_v9, %v1406_v57  ;;  %1423 = vst.msk [vmem:[#allocation2 + $0x108] sm:$0xff] %vm505_vm2, %v1406_v57  ;;  %v1555_v46 = vld [vmem:[#allocation2 + $0x50] sm:$0xff]  ;;  %v1590_v57 = vld [vmem:[#allocation2 + $0x168] sm:$0xff] }
 0x3d1   : > { %v1274_v11 = vpop.permute.xlu1 %1273  ;;  %1427 = vst.msk [vmem:[#allocation2 + $0x108] sm:$0xff] %vm2833_vm0, %v1913_v41  ;;  %v1603_v47 = vpack.c.bf16 %v1555_v46, %v1553_v44 }
 0x3d2   : > { %v2679_v58 = vsel %vm426_vm7, %v1272_v63, %v1274_v11 }
 0x3d5   : > { %v2681_v19 = vpop.permute.xlu0 %1449 }
 0x3d7   : > { %v1360_v22 = vpop.permute.xlu2 %1359 }
 0x3d8   : > { %1376 = vst.msk [vmem:[#allocation2 + $0xb0] sm:$0xff] %vm2834_vm14, %v1360_v22  ;;  %vm2849_vm14 = vmmov %vm2843_vm6  ;;  %v1578_v44 = vld [vmem:[#allocation2 + $0x108] sm:$0xff] }
 0x3d9   : > { %1380 = vst.msk [vmem:[#allocation2 + $0xb0] sm:$0xff] %vm533_vm1, %v1913_v41  ;;  %v1358_v27 = vpop.permute.xlu1 %1357 }
 0x3da   : > { %v1364_v6 = vsel %vm533_vm1, %v1356_v18, %v1358_v27 }
 0x3dd   : > { %v2687_v30 = vpop.permute.xlu0 %1407 }
 0x3df   : > { %v2689_v24 = vpop.permute.xlu2 %1317 }
 0x3e0   : > { %1334 = vst.msk [vmem:[#allocation2 + $0x80] sm:$0xff] %vm2835_vm12, %v2689_v24  ;;  %v1567_v38 = vld [vmem:[#allocation2 + $0xb0] sm:$0xff]  ;;  %vm2851_vm12 = vmmov %vm2843_vm6 }
 0x3e1   : > { %1338 = vst.msk [vmem:[#allocation2 + $0x80] sm:$0xff] %vm481_vm9, %v1913_v41  ;;  %v1316_v28 = vpop.permute.xlu1 %1315  ;;  %v1609_v42 = vpack.c.bf16 %v1567_v38, %v1565_v32 }
 0x3e2   : > { %v2696_v26 = vsel %vm481_vm9, %v1314_v49, %v1316_v28  ;;  %v1594_v49 = vld [vmem:[#allocation2 + $0x188] sm:$0xff] }
 0x3e3   : > { %1647 = vmatpush.bf16.msrb.mxu0 %v1609_v42 }
 0x3e5   : > { %v1278_v31 = vpop.permute.xlu0 %1277 }
 0x3e6   : > { %v2699_v33 = vsel %vm426_vm7, %v1276_v8, %v1278_v31 }
 0x3e7   : > { %v2701_v55 = vpop.permute.xlu2 %1239 }
 0x3e8   : > { %1256 = vst.msk [vmem:[#allocation2 + $0x20] sm:$0xff] %vm2836_vm15, %v2701_v55  ;;  %v1561_v25 = vld [vmem:[#allocation2 + $0x80] sm:$0xff] }
 0x3e9   : > { %1260 = vst.msk [vmem:[#allocation2 + $0x20] sm:$0xff] %vm2837_vm11, %v1913_v41  ;;  %v1482_v48 = vpop.permute.xlu1 %1481  ;;  %v1607_v62 = vpack.c.bf16 %v1563_v37, %v1561_v25  ;;  %v1588_v37 = vld [vmem:[#allocation2 + $0x158] sm:$0xff] }
 0x3ea   : > { %v1485_v23 = vsel %vm671_vm3, %v1480_v7, %v1482_v48  ;;  %1497 = vst.msk [vmem:[#allocation2 + $0x178] sm:$0xff] %vm671_vm3, %v1482_v48  ;;  %vm2840_vm3 = vcmask 1048440  }
 0x3eb   : > { %1500 = vst.msk [vmem:[#allocation2 + $0x178] sm:$0xff] %vm687_vm4, %v1913_v41  ;;  %1648 = vmatpush.bf16.msrb.mxu0 %v1607_v62  ;;  %vm2841_vm4 = vcmask 1043456   ;;  %v1621_v16 = vpack.c.bf16 %v1485_v23, %v2647_v5  ;;  %v1718_v5 = vld [vmem:[%s2808_s7 + $0x8] sm:$0xf] }
 0x3ec   : > { %vm2845_vm0 = vmmov %vm2841_vm4  ;;  %1726 = vperm.xlu1 %1868, %v1718_v5   ;;  %v1849_v23 = vld [vmem:[%s2806_s5 + $0x4] sm:$0x30] }
 0x3ed   : > { %v2711_v56 = vpop.permute.xlu0 %1231 }
 0x3ee   : > { %1252 = vst.msk [vmem:[#allocation2] sm:$0xff] %vm2838_vm5, %v2711_v56 }
 0x3ef   : > { %1258 = vst.msk [vmem:[#allocation2] sm:$0xff] %vm2839_vm13, %v1913_v41  ;;  %v1270_v39 = vpop.permute.xlu2 %1269  ;;  %1649 = vmatpush.bf16.msrb.mxu0 %v1605_v40 }
 0x3f0   : > { %v1549_v27 = vld [vmem:[#allocation2 + $0x20] sm:$0xff] }
 0x3f1   : > { %v1524_v35 = vpop.permute.xlu1 %1523 }
 0x3f2   : > { %v1527_v29 = vsel %vm362_vm10, %v1522_v14, %v1524_v35  ;;  %1539 = vst.msk [vmem:[#allocation2 + $0x1a8] sm:$0xff] %vm362_vm10, %v1524_v35  ;;  %vm2842_vm10 = vmmov %vm2838_vm5  ;;  %v1624_v14 = vpack.c.bf16 %v1596_v2, %v1594_v49  ;;  %v1592_v11 = vld [vmem:[#allocation2 + $0x178] sm:$0xff] }
 0x3f3   : > { %v1625_v43 = vpack.c.bf16 %v1527_v29, %v1527_v29  ;;  %1542 = vst.msk [vmem:[#allocation2 + $0x1a8] sm:$0xff] %vm2840_vm3, %v1913_v41  ;;  %1650 = vmatpush.bf16.msrb.mxu0 %v1603_v47  ;;  %v1618_v29 = vpack.c.bf16 %v1584_v4, %v1582_v54 }
 0x3f5   : > { %v1362_v10 = vpop.permute.xlu0 %1361  ;;  %v1640_v53 = vsel %vm2841_vm4, %v1625_v43, 0 }
 0x3f6   : > { %v1365_v51 = vsel %vm533_vm1, %v1360_v22, %v1362_v10  ;;  %1661 = vmatpush.bf16.msrb.mxu2 %v1640_v53  ;;  %vm2844_vm1 = vcmask 1047680   ;;  %v1545_v32 = vld [vmem:[#allocation2] sm:$0xff] }
 0x3f7   : > { %v1610_v34 = vpack.c.bf16 %v1365_v51, %v1364_v6  ;;  %v2723_v12 = vpop.permute.xlu2 %1235 }
 0x3f8   : > { %1254 = vst.msk [vmem:[#allocation2 + $0x10] sm:$0xff] %vm2842_vm10, %v2723_v12 }
 0x3f9   : > { %1675 = vmatpush.bf16.msra.mxu1 %v1610_v34  ;;  %1259 = vst.msk [vmem:[#allocation2 + $0x10] sm:$0xff] %vm2843_vm6, %v1913_v41  ;;  %v1268_v45 = vpop.permute.xlu1 %1267 }
 0x3fa   : > { %v2732_v63 = vsel %vm426_vm7, %v1268_v45, %v1270_v39  ;;  %1288 = vst.msk [vmem:[#allocation2 + $0x30] sm:$0xff] %vm2844_vm1, %v1268_v45  ;;  %1662 = vmatpush.bf16.msrb.mxu2 %v1623_v17  ;;  %v1598_v18 = vld [vmem:[#allocation2 + $0x1a8] sm:$0xff] }
 0x3fb   : > { %1294 = vst.msk [vmem:[#allocation2 + $0x30] sm:$0xff] %vm426_vm7, %v1913_v41  ;;  %v1626_v3 = vpack.c.bf16 %v1598_v18, %v1598_v18  ;;  %vm2846_vm7 = vcmask 1048456  }
 0x3fd   : > { %v1320_v1 = vpop.permute.xlu0 %1319  ;;  %v1643_v8 = vsel %vm2845_vm0, %v1626_v3, 0 }
 0x3fe   : > { %v1323_v7 = vsel %vm481_vm9, %v2689_v24, %v1320_v1  ;;  %1663 = vmatpush.bf16.msrb.mxu2 %v1621_v16  ;;  %1689 = vmatpush.bf16.msra.mxu3 %v1643_v8  ;;  %v1622_v24 = vpack.c.bf16 %v1592_v11, %v1590_v57  ;;  %vm2847_vm9 = vmmov %vm2843_vm6 }
 0x3ff   : > { %v1608_v9 = vpack.c.bf16 %v2621_v20, %v1323_v7  ;;  %v1606_v20 = vpack.c.bf16 %v2696_v26, %v2635_v60  ;;  %v1604_v60 = vpack.c.bf16 %v2699_v33, %v2679_v58  ;;  %v1834_v26 = vld [vmem:[%s2806_s5] sm:$0xf]  ;;  %v1848_v58 = vld [vmem:[%s2806_s5 + $0x4] sm:$0xf]  ;;  %v1836_v33 = vld [vmem:[%s2806_s5 + $0x8] sm:$0x30] }
 0x400   : > { %v1547_v38 = vld [vmem:[#allocation2 + $0x10] sm:$0xff]  ;;  %v1839_v35 = vor.u32 %v1848_v58, %v1836_v33 }
 0x401   : > { %1676 = vmatpush.bf16.msra.mxu1 %v1608_v9  ;;  %v1452_v22 = vpop.permute.xlu1 %1451 }
 0x402   : > { %v1455_v6 = vsel %vm453_vm8, %v2681_v19, %v1452_v22  ;;  %1467 = vst.msk [vmem:[#allocation2 + $0x148] sm:$0xff] %vm453_vm8, %v1452_v22  ;;  %1690 = vmatpush.bf16.msra.mxu3 %v1624_v14  ;;  %v1551_v31 = vld [vmem:[#allocation2 + $0x30] sm:$0xff]  ;;  %vm2848_vm8 = vcmask 1048568  }
 0x403   : > { %v1619_v28 = vpack.c.bf16 %v2587_v36, %v1455_v6  ;;  %1470 = vst.msk [vmem:[#allocation2 + $0x148] sm:$0xff] %vm2846_vm7, %v1913_v41  ;;  %v1601_v48 = vpack.c.bf16 %v1551_v31, %v1549_v27  ;;  %v1599_v36 = vpack.c.bf16 %v1547_v38, %v1545_v32 }
 0x405   : > { %v1242_v42 = vpop.permute.xlu0 %1241  ;;  %1677 = vmatpush.bf16.msra.mxu1 %v1606_v20  ;;  %1664 = vmatpush.bf16.msrb.mxu2 %v1619_v28 }
 0x406   : > { %v1245_v19 = vsel %vm2847_vm9, %v2701_v55, %v1242_v42  ;;  %1651 = vmatpush.bf16.msrb.mxu0 %v1601_v48  ;;  %1691 = vmatpush.bf16.msra.mxu3 %v1622_v24  ;;  %v1835_v55 = vor.u32 %v1849_v23, %v1834_v26 }
 0x407   : > { %1257 = vst [vmem:[#allocation2 + $0x28] sm:$0xff] %v1245_v19  ;;  %v1602_v52 = vpack.c.bf16 %v2732_v63, %v1245_v19 }
 0x409   : > { %1678 = vmatpush.bf16.msra.mxu1 %v1604_v60  ;;  %v1410_v25 = vpop.permute.xlu1 %1409  ;;  %1665 = vmatpush.bf16.msrb.mxu2 %v1617_v15 }
 0x40a   : > { %v1413_v62 = vsel %vm505_vm2, %v2687_v30, %v1410_v25  ;;  %1425 = vst.msk [vmem:[#allocation2 + $0x118] sm:$0xff] %vm505_vm2, %v1410_v25  ;;  %1652 = vmatpush.bf16.msrb.mxu0 %v1599_v36  ;;  %v1586_v59 = vld [vmem:[#allocation2 + $0x148] sm:$0xff]  ;;  %vm2850_vm2 = vcmask 719872  }
 0x40b   : > { %v1615_v15 = vpack.c.bf16 %v1413_v62, %v2673_v50  ;;  %1428 = vst.msk [vmem:[#allocation2 + $0x118] sm:$0xff] %vm2848_vm8, %v1913_v41  ;;  %v1620_v39 = vpack.c.bf16 %v1588_v37, %v1586_v59  ;;  %vm2852_vm15 = vmmov %vm2850_vm2 }
 0x40d   : > { %v1238_v40 = vpop.permute.xlu0 %1237  ;;  %1679 = vmatpush.bf16.msra.mxu1 %v1602_v52  ;;  %1666 = vmatpush.bf16.msrb.mxu2 %v1615_v15 }
 0x40e   : > { %v1244_v30 = vsel %vm2849_vm14, %v2723_v12, %v1238_v40  ;;  %1653 = vmatmul.bf16.vlgmr.msrb.gmra.mxu0 %v1835_v55  ;;  %1692 = vmatpush.bf16.msra.mxu3 %v1620_v39 }
 0x40f   : > { %1255 = vst [vmem:[#allocation2 + $0x18] sm:$0xff] %v1244_v30 }
 0x410   : > { %1840 = vmatmul.msk.bf16.vlgmr.msrb.gmra.mxu2 %vm2850_vm2, %v1839_v35 }
 0x411   : > { %v1234_v43 = vpop.permute.xlu1 %1233 }
 0x412   : > { %1693 = vmatpush.bf16.msra.mxu3 %v1618_v29  ;;  %v1243_v41 = vsel %vm2851_vm12, %v2711_v56, %v1234_v43  ;;  %v1580_v50 = vld [vmem:[#allocation2 + $0x118] sm:$0xff] }
 0x413   : > { %1253 = vst [vmem:[#allocation2 + $0x8] sm:$0xff] %v1243_v41  ;;  %v1600_v46 = vpack.c.bf16 %v1244_v30, %v1243_v41  ;;  %v1616_v10 = vpack.c.bf16 %v1580_v50, %v1578_v44 }
 0x415   : > { %1680 = vmatpush.bf16.msra.mxu1 %v1600_v46 }
 0x416   : > { %1694 = vmatpush.bf16.msra.mxu3 %v1616_v10 }
 0x418   : > { %1681 = vmatmul.bf16.vlgmr.msra.gmra.mxu1 %v1835_v55 }
 0x419   : > { %1841 = vmatmul.msk.bf16.vlgmr.msra.gmra.mxu3 %vm2852_vm15, %v1839_v35  ;;  %v1711_v13 = vpop.permute.xlu2 %1710 }
 0x42f   : > { %v1706_v53 = vpop.permute.xlu1 %1705  ;;  %v1722_v12 = vpop.permute.xlu0 %1721 }
 0x45e   : > { %v1727_v1 = vpop.permute.xlu1 %1726 }
 0x48b   : > { %v1654_v47 = vpop.f32.mrf.mxu0 }
 0x493   : > { %v1668_v51 = vpop.f32.mrf.mxu2  ;;  %v1656_v45 = vpop.f32.mrf.mxu0 }
 0x494   : > { %v1669_v34 = vadd.f32 %v1668_v51, %v1654_v47 }
 0x495   : > { %v1682_v63 = vpop.f32.mrf.mxu1 }
 0x496   : > { %v1713_v17 = vmul.f32 %v1706_v53, %v1669_v34 }
 0x498   : > { %v1729_v56 = vadd.f32 %v1722_v12, %v1713_v17 }
 0x49a   : > { %1733 = vst [vmem:[%s325_s9] sm:$0xff] %v1729_v56 }
 0x49b   : > { %v1670_v61 = vpop.f32.mrf.mxu2 }
 0x49c   : > { %v1696_v18 = vpop.f32.mrf.mxu3  ;;  %v1671_v21 = vadd.f32 %v1670_v61, %v1656_v45 }
 0x49d   : > { %v1697_v0 = vadd.f32 %v1696_v18, %v1682_v63  ;;  %v1684_v8 = vpop.f32.mrf.mxu1 }
 0x49e   : > { %v1715_v3 = vmul.f32 %v1711_v13, %v1671_v21 }
 0x49f   : > { %v1714_v49 = vmul.f32 %v1706_v53, %v1697_v0 }
 0x4a0   : > { %v1731_v2 = vadd.f32 %v1727_v1, %v1715_v3 }
 0x4a1   : > { %v1730_v16 = vadd.f32 %v1722_v12, %v1714_v49 }
 0x4a2   : > { %1735 = vst [vmem:[%s325_s9 + $0x10] sm:$0xf] %v1731_v2 }
 0x4a3   : > { %1734 = vst [vmem:[%s325_s9 + $0x8] sm:$0xff] %v1730_v16 }
 0x4a4   : > { %v1698_v7 = vpop.f32.mrf.mxu3 }
 0x4a5   : > { %v1699_v9 = vadd.f32 %v1698_v7, %v1684_v8 }
 0x4a7   : > { %v1716_v14 = vmul.f32 %v1711_v13, %v1699_v9 }
 0x4a9   : > { %v1732_v57 = vadd.f32 %v1727_v1, %v1716_v14 }
 0x4ab   : > { %1736 = vst [vmem:[%s325_s9 + $0x18] sm:$0xf] %v1732_v57 }
 0x4ac PF: > { %s18_s27 = sadd.s32 1, %s1903_s27  }
 0x4ad   : > { %p15_p4 = scmp.ge.s32.totalorder %s18_s27, 4  }
 0x4af   :  { %17 = sbr.rel (!%p15_p4) target bundleno = 1 (0x1), region = 86 }

</bundles_post_ra>
